<compile_context>
chip_gen: v6e
topology: v6e:2x2x1
jax: 0.10.0
libtpu: 0.0.40
codegen_flags: <defaults>
</compile_context>

<pallas_src>
import functools
import math

import jax
import jax.numpy as jnp
from jax import lax
from jax.experimental import pallas as pl
from jax.experimental.pallas import tpu as pltpu


def _round_up(x, m):
    return ((x + m - 1) // m) * m


# ----------------------------------------------------------------------------
# Kernel
# ----------------------------------------------------------------------------
def lstm_chunk_kernel(x_ref, wih_hbm, whh_hbm, b_ref,
                      out_ref, cN_ref,
                      wih_sc, whh_sc, gx_sc, h_sc, c_sc, dma_sem,
                      *, seq_len, mask_tail, unroll):
    """One time-chunk of an LSTM layer.

    Grid = (batch_groups [parallel], time_chunks [arbitrary / serial]).

    x_ref   : (T_c, B_blk, I_pad)  input slice of this chunk (param dtype)
    wih_hbm : (I_pad, 4*H_pad)     W_ih^T in HBM  (copied once into wih_sc)
    whh_hbm : (H_pad, 4*H_pad)     W_hh^T in HBM  (copied once into whh_sc)
    b_ref   : (1, 4*H_pad)         b_ih + b_hh, gate order [i, f, o, g], f32
    out_ref : (T_c, B_blk, H_pad)  h_t for every timestep of the chunk
    cN_ref  : (B_blk, H_pad)       final cell state (written on the last chunk)
    *_sc    : VMEM scratch, persistent across grid steps (time chunks)
    """
    chunk = pl.program_id(1)
    T_c, B_blk, I_pad = x_ref.shape
    Hp = h_sc.shape[1]

    @pl.when(chunk == 0)
    def _():
        # Resident, single-buffered weights: one DMA per layer (per core /
        # batch group) instead of auto-pipeline double-buffering.
        cp_ih = pltpu.make_async_copy(wih_hbm, wih_sc, dma_sem.at[0])
        cp_hh = pltpu.make_async_copy(whh_hbm, whh_sc, dma_sem.at[1])
        cp_ih.start()
        cp_hh.start()
        cp_ih.wait()
        cp_hh.wait()
        h_sc[...] = jnp.zeros_like(h_sc)
        c_sc[...] = jnp.zeros_like(c_sc)

    # ---- Fused input projection for the whole chunk: one big MXU matmul ----
    x2 = x_ref[...].reshape(T_c * B_blk, I_pad)
    gx_sc[...] = (jnp.dot(x2, wih_sc[...], preferred_element_type=jnp.float32)
                  + b_ref[...])

    whh = whh_sc[...]

    # ---- Serial recurrence over the chunk's timesteps -----------------------
    def step(t, carry):
        h_prev, c_prev = carry
        row = pl.multiple_of(t * B_blk, B_blk)
        gates = gx_sc[pl.ds(row, B_blk), :] + jnp.dot(
            h_prev.astype(whh.dtype), whh, preferred_element_type=jnp.float32)
        # Gate layout was permuted to [i, f, o, g] in the wrapper:
        # one wide sigmoid slab + one tanh slab, all lane-aligned (Hp % 128 == 0).
        sig = jax.nn.sigmoid(gates[:, :3 * Hp])
        i_g = sig[:, 0 * Hp:1 * Hp]
        f_g = sig[:, 1 * Hp:2 * Hp]
        o_g = sig[:, 2 * Hp:3 * Hp]
        g_g = jnp.tanh(gates[:, 3 * Hp:])
        c_new = f_g * c_prev + i_g * g_g
        h_new = o_g * jnp.tanh(c_new)
        if mask_tail:  # static: only emitted when S was padded up to a chunk multiple
            valid = (chunk * T_c + t) < seq_len
            h_new = jnp.where(valid, h_new, h_prev)
            c_new = jnp.where(valid, c_new, c_prev)
        out_ref[t] = h_new.astype(out_ref.dtype)   # VMEM store; HBM writeback per chunk
        return h_new, c_new

    h, c = lax.fori_loop(0, T_c, step, (h_sc[...], c_sc[...]), unroll=unroll)
    h_sc[...] = h
    c_sc[...] = c

    @pl.when(chunk == pl.num_programs(1) - 1)
    def _():
        cN_ref[...] = c.astype(cN_ref.dtype)


# ----------------------------------------------------------------------------
# Weight preparation (gate reorder [i,f,g,o] -> [i,f,o,g], lane/sublane padding)
# ----------------------------------------------------------------------------
def _reorder_ifog(a, H):
    """PyTorch LSTM gate blocks are [i, f, g, o] along axis 0; reorder to [i, f, o, g]."""
    return jnp.concatenate([a[0:H], a[H:2 * H], a[3 * H:4 * H], a[2 * H:3 * H]],
                           axis=0)


def _pad_gate_blocks(a, H, H_pad, in_pad=None):
    """Pad each of the 4 gate blocks (axis 0) from H to H_pad; pad axis 1 to in_pad."""
    blocks = []
    for g in range(4):
        blk = a[g * H:(g + 1) * H]
        if blk.ndim == 1:
            blk = jnp.pad(blk, (0, H_pad - H))
        else:
            blk = jnp.pad(blk, ((0, H_pad - H), (0, in_pad - blk.shape[1])))
        blocks.append(blk)
    return jnp.concatenate(blocks, axis=0)


def _prep_lstm_weights(w_ih, w_hh, b_ih, b_hh, H, H_pad, I_pad, param_dtype):
    w_ih = _reorder_ifog(jnp.asarray(w_ih, jnp.float32), H)
    w_hh = _reorder_ifog(jnp.asarray(w_hh, jnp.float32), H)
    b = _reorder_ifog(jnp.asarray(b_ih, jnp.float32)
                      + jnp.asarray(b_hh, jnp.float32), H)
    wih_t = _pad_gate_blocks(w_ih, H, H_pad, I_pad).T.astype(param_dtype)  # (I_pad, 4H_pad)
    whh_t = _pad_gate_blocks(w_hh, H, H_pad, H_pad).T.astype(param_dtype)  # (H_pad, 4H_pad)
    bias = _pad_gate_blocks(b, H, H_pad).reshape(1, 4 * H_pad)             # f32
    return wih_t, whh_t, bias


# ----------------------------------------------------------------------------
# VMEM-aware chunk sizing
# ----------------------------------------------------------------------------
def _vmem_budget_bytes():
    try:
        cap = int(pltpu.get_tpu_info().vmem_capacity_bytes)
        if cap > 0:
            return (cap * 3) // 4          # headroom for compiler temporaries
    except Exception:
        pass
    return 48 * 1024 * 1024                # safe on every generation (v7x has 64 MiB)


def _chunk_plan(S, B_blk, I_pad, H_pad, x_bytes, p_bytes, o_bytes, budget):
    """Largest time chunk T_c whose VMEM footprint fits the budget."""
    fixed = (I_pad * 4 * H_pad * p_bytes       # W_ih^T  (single-buffered scratch)
             + H_pad * 4 * H_pad * p_bytes     # W_hh^T  (single-buffered scratch)
             + 2 * (4 * H_pad) * 4             # bias    (tiny, double-buffered)
             + 2 * B_blk * H_pad * 4           # h / c scratch
             + 2 * B_blk * H_pad * 4)          # c_N output (double-buffered)
    per_t = (2 * B_blk * I_pad * x_bytes       # x chunk      (double-buffered)
             + 2 * B_blk * H_pad * o_bytes     # out chunk    (double-buffered)
             + B_blk * 4 * H_pad * 4)          # gates_x scratch (f32)
    avail = budget - fixed
    T_c = int(max(1, min(S, avail // per_t))) if avail >= per_t else 1
    required = fixed + per_t * T_c
    return T_c, required


# ----------------------------------------------------------------------------
# One LSTM layer
# ----------------------------------------------------------------------------
def lstm_layer(x, w_ih, w_hh, b_ih, b_hh, *, param_dtype=jnp.float32):
    """x: (S, B, I) (B / I may already be padded).  Returns
    (out (S, B_pad, H_pad), h_N (B_pad, H_pad) f32, c_N (B_pad, H_pad) f32)."""
    S, B_in, I_in = x.shape
    H = w_hh.shape[1]

    B_pad = _round_up(B_in, 8)     # full sublanes
    H_pad = _round_up(H, 128)      # lane-aligned gate slices / dense stores
    I_pad = _round_up(I_in, 128)

    # Batch split to use v7x's 2nd TensorCore (size-1 axis otherwise; only when
    # each half keeps full sublanes).
    n_bgroups = 2 if (B_pad >= 16 and B_pad % 16 == 0) else 1
    B_blk = B_pad // n_bgroups

    x_dtype = param_dtype
    out_dtype = param_dtype
    budget = _vmem_budget_bytes()
    T_c, required = _chunk_plan(
        S, B_blk, I_pad, H_pad,
        jnp.dtype(x_dtype).itemsize, jnp.dtype(param_dtype).itemsize,
        jnp.dtype(out_dtype).itemsize, budget)
    n_chunks = -(-S // T_c)
    S_pad = n_chunks * T_c
    mask_tail = S_pad != S
    vmem_limit = int(min(max(budget, required + (4 << 20)), 128 << 20))

    wih_t, whh_t, bias = _prep_lstm_weights(w_ih, w_hh, b_ih, b_hh,
                                            H, H_pad, I_pad, param_dtype)

    x_p = x.astype(x_dtype)
    if (S_pad, B_pad, I_pad) != (S, B_in, I_in):
        x_p = jnp.pad(x_p, ((0, S_pad - S), (0, B_pad - B_in), (0, I_pad - I_in)))

    kernel = functools.partial(lstm_chunk_kernel, seq_len=S,
                               mask_tail=mask_tail, unroll=int(min(T_c, 8)))

    grid_spec = pltpu.PrefetchScalarGridSpec(
        num_scalar_prefetch=0,
        grid=(n_bgroups, n_chunks),
        in_specs=[
            pl.BlockSpec((T_c, B_blk, I_pad), lambda g, c: (c, g, 0)),
            pl.BlockSpec(memory_space=pl.ANY),       # W_ih^T stays in HBM
            pl.BlockSpec(memory_space=pl.ANY),       # W_hh^T stays in HBM
            pl.BlockSpec((1, 4 * H_pad), lambda g, c: (0, 0)),
        ],
        out_specs=(
            pl.BlockSpec((T_c, B_blk, H_pad), lambda g, c: (c, g, 0)),
            pl.BlockSpec((B_blk, H_pad), lambda g, c: (g, 0)),
        ),
        scratch_shapes=[
            pltpu.VMEM((I_pad, 4 * H_pad), param_dtype),        # resident W_ih^T
            pltpu.VMEM((H_pad, 4 * H_pad), param_dtype),        # resident W_hh^T
            pltpu.VMEM((T_c * B_blk, 4 * H_pad), jnp.float32),  # chunk gates_x
            pltpu.VMEM((B_blk, H_pad), jnp.float32),            # h state
            pltpu.VMEM((B_blk, H_pad), jnp.float32),            # c state
            pltpu.SemaphoreType.DMA((2,)),
        ],
    )

    out_p, c_n = pl.pallas_call(
        kernel,
        out_shape=(jax.ShapeDtypeStruct((S_pad, B_pad, H_pad), out_dtype),
                   jax.ShapeDtypeStruct((B_pad, H_pad), jnp.float32)),
        grid_spec=grid_spec,
        compiler_params=pltpu.CompilerParams(
            # Batch groups are independent ("parallel"); the time recurrence is
            # serial and MUST stay "arbitrary".
            dimension_semantics=("parallel", "arbitrary"),
            vmem_limit_bytes=vmem_limit),
    )(x_p, wih_t, whh_t, bias)

    out_p = out_p[:S]                       # drop padded tail timesteps
    h_n = out_p[S - 1].astype(jnp.float32)  # hidden == last timestep output
    return out_p, h_n, c_n


# ----------------------------------------------------------------------------
# Encoder forward + reference
# ----------------------------------------------------------------------------
def init_encoder_params(key, input_size, hidden_size, num_layers):
    """nn.LSTM-shaped params, U(-1/sqrt(H), 1/sqrt(H))."""
    params = []
    k = 1.0 / math.sqrt(hidden_size)
    for layer in range(num_layers):
        in_sz = input_size if layer == 0 else hidden_size
        key, k1, k2, k3, k4 = jax.random.split(key, 5)
        w_ih = jax.random.uniform(k1, (4 * hidden_size, in_sz), jnp.float32, -k, k)
        w_hh = jax.random.uniform(k2, (4 * hidden_size, hidden_size), jnp.float32, -k, k)
        b_ih = jax.random.uniform(k3, (4 * hidden_size,), jnp.float32, -k, k)
        b_hh = jax.random.uniform(k4, (4 * hidden_size,), jnp.float32, -k, k)
        params.append((w_ih, w_hh, b_ih, b_hh))
    return params


def encoder_forward(x, params, *, param_dtype=jnp.float32):
    """Encoder.forward: returns (hidden, cell), each (num_layers, batch, hidden)."""
    # TODO(synk): nn.LSTM inter-layer dropout is train-time only; not applied here.
    S, B, _ = x.shape
    H = params[0][1].shape[1]
    h_list, c_list = [], []
    layer_in = x
    for (w_ih, w_hh, b_ih, b_hh) in params:
        out, h_n, c_n = lstm_layer(layer_in, w_ih, w_hh, b_ih, b_hh,
                                   param_dtype=param_dtype)
        h_list.append(h_n[:B, :H])
        c_list.append(c_n[:B, :H])
        layer_in = out          # stays (B_pad, H_pad)-padded between layers
    hidden = jnp.stack(h_list, axis=0).astype(jnp.float32)
    cell = jnp.stack(c_list, axis=0).astype(jnp.float32)
    return hidden, cell


def encoder_forward_ref(x, params):
    """Pure-JAX reference LSTM (same semantics as PyTorch nn.LSTM, no dropout)."""
    S, B, _ = x.shape
    h_list, c_list = [], []
    layer_in = x
    for (w_ih, w_hh, b_ih, b_hh) in params:
        H = w_hh.shape[1]
        h = jnp.zeros((B, H), jnp.float32)
        c = jnp.zeros((B, H), jnp.float32)
        outs = []
        for t in range(S):
            gates = layer_in[t] @ w_ih.T + h @ w_hh.T + b_ih + b_hh
            i_g = jax.nn.sigmoid(gates[:, 0 * H:1 * H])
            f_g = jax.nn.sigmoid(gates[:, 1 * H:2 * H])
            g_g = jnp.tanh(gates[:, 2 * H:3 * H])
            o_g = jax.nn.sigmoid(gates[:, 3 * H:4 * H])
            c = f_g * c + i_g * g_g
            h = o_g * jnp.tanh(c)
            outs.append(h)
        layer_in = jnp.stack(outs, axis=0)
        h_list.append(h)
        c_list.append(c)
    return jnp.stack(h_list, axis=0), jnp.stack(c_list, axis=0)


if __name__ == "__main__":
    # Small shapes consistent with the module's forward:
    # x: (seq_len, batch, input_size); hidden/cell: (num_layers, batch, hidden_size)
    seq_len, batch, input_size, hidden_size, num_layers = 8, 2, 32, 32, 2

    key = jax.random.PRNGKey(0)
    key, xk, pk = jax.random.split(key, 3)
    x = jax.random.normal(xk, (seq_len, batch, input_size), jnp.float32)
    params = init_encoder_params(pk, input_size, hidden_size, num_layers)

    hidden, cell = encoder_forward(x, params)
    hidden = jax.block_until_ready(hidden)
    cell = jax.block_until_ready(cell)

    h_ref, c_ref = encoder_forward_ref(x, params)
    assert hidden.shape == (num_layers, batch, hidden_size)
    assert cell.shape == (num_layers, batch, hidden_size)
    assert jnp.allclose(hidden, h_ref, atol=1e-4, rtol=1e-4)
    assert jnp.allclose(cell, c_ref, atol=1e-4, rtol=1e-4)

    print("KERNEL_OK")
</pallas_src>

<mosaic_0001>
module attributes {stable_mosaic.version = 11 : i64} {
  func.func @lstm_chunk_kernel(%arg0: i32, %arg1: i32, %arg2: memref<8x8x128xf32, #tpu.memory_space<vmem>>, %arg3: memref<128x512xf32, #tpu.memory_space<any>>, %arg4: memref<128x512xf32, #tpu.memory_space<any>>, %arg5: memref<1x512xf32, #tpu.memory_space<vmem>>, %arg6: memref<8x8x128xf32, #tpu.memory_space<vmem>>, %arg7: memref<8x128xf32, #tpu.memory_space<vmem>>, %arg8: memref<128x512xf32, #tpu.memory_space<vmem>>, %arg9: memref<128x512xf32, #tpu.memory_space<vmem>>, %arg10: memref<64x512xf32, #tpu.memory_space<vmem>>, %arg11: memref<8x128xf32, #tpu.memory_space<vmem>>, %arg12: memref<8x128xf32, #tpu.memory_space<vmem>>, %arg13: memref<2x!tpu.dma_semaphore, #tpu.memory_space<semaphore_mem>>) attributes {dimension_semantics = [#tpu.dimension_semantics<parallel>, #tpu.dimension_semantics<arbitrary>], iteration_bounds = array<i64: 1, 1>, scalar_prefetch = 0 : i64, scratch_operands = 6 : i64, tpu.core_type = #tpu.core_type<tc>, window_params = [{transform_indices = @transform_0, window_bounds = array<i64: 8, 8, 128>}, {}, {}, {pipeline_mode = #tpu.pipeline_mode<synchronous>, transform_indices = @transform_3, window_bounds = array<i64: 1, 512>}, {transform_indices = @transform_4, window_bounds = array<i64: 8, 8, 128>}, {transform_indices = @transform_5, window_bounds = array<i64: 8, 128>}]} {
    %c0_i32 = arith.constant 0 : i32
    %0 = arith.cmpi eq, %arg1, %c0_i32 : i32
    %1 = arith.extui %0 : i1 to i32
    %c0_i32_0 = arith.constant 0 : i32
    %2 = arith.cmpi ne, %1, %c0_i32_0 : i32
    scf.if %2 {
      %c0_i32_70 = arith.constant 0 : i32
      %227 = tpu.memref_slice %arg13[%c0_i32_70] : memref<2x!tpu.dma_semaphore, #tpu.memory_space<semaphore_mem>> -> memref<1x!tpu.dma_semaphore, #tpu.memory_space<semaphore_mem>>
      %228 = tpu.memref_squeeze %227 : memref<1x!tpu.dma_semaphore, #tpu.memory_space<semaphore_mem>> -> memref<!tpu.dma_semaphore, #tpu.memory_space<semaphore_mem>>
      tpu.enqueue_dma source(%arg3 : memref<128x512xf32, #tpu.memory_space<any>>) target(%arg8 : memref<128x512xf32, #tpu.memory_space<vmem>>) target_semaphore(%228 : memref<!tpu.dma_semaphore, #tpu.memory_space<semaphore_mem>>)
      %c1_i32_71 = arith.constant 1 : i32
      %229 = tpu.memref_slice %arg13[%c1_i32_71] : memref<2x!tpu.dma_semaphore, #tpu.memory_space<semaphore_mem>> -> memref<1x!tpu.dma_semaphore, #tpu.memory_space<semaphore_mem>>
      %230 = tpu.memref_squeeze %229 : memref<1x!tpu.dma_semaphore, #tpu.memory_space<semaphore_mem>> -> memref<!tpu.dma_semaphore, #tpu.memory_space<semaphore_mem>>
      tpu.enqueue_dma source(%arg4 : memref<128x512xf32, #tpu.memory_space<any>>) target(%arg9 : memref<128x512xf32, #tpu.memory_space<vmem>>) target_semaphore(%230 : memref<!tpu.dma_semaphore, #tpu.memory_space<semaphore_mem>>)
      %c0_i32_72 = arith.constant 0 : i32
      %231 = tpu.memref_slice %arg13[%c0_i32_72] : memref<2x!tpu.dma_semaphore, #tpu.memory_space<semaphore_mem>> -> memref<1x!tpu.dma_semaphore, #tpu.memory_space<semaphore_mem>>
      %232 = tpu.memref_squeeze %231 : memref<1x!tpu.dma_semaphore, #tpu.memory_space<semaphore_mem>> -> memref<!tpu.dma_semaphore, #tpu.memory_space<semaphore_mem>>
      tpu.wait_dma2 semaphore(%232 : memref<!tpu.dma_semaphore, #tpu.memory_space<semaphore_mem>>) src(%arg3 : memref<128x512xf32, #tpu.memory_space<any>>) dst(%arg8 : memref<128x512xf32, #tpu.memory_space<vmem>>)
      %c1_i32_73 = arith.constant 1 : i32
      %233 = tpu.memref_slice %arg13[%c1_i32_73] : memref<2x!tpu.dma_semaphore, #tpu.memory_space<semaphore_mem>> -> memref<1x!tpu.dma_semaphore, #tpu.memory_space<semaphore_mem>>
      %234 = tpu.memref_squeeze %233 : memref<1x!tpu.dma_semaphore, #tpu.memory_space<semaphore_mem>> -> memref<!tpu.dma_semaphore, #tpu.memory_space<semaphore_mem>>
      tpu.wait_dma2 semaphore(%234 : memref<!tpu.dma_semaphore, #tpu.memory_space<semaphore_mem>>) src(%arg4 : memref<128x512xf32, #tpu.memory_space<any>>) dst(%arg9 : memref<128x512xf32, #tpu.memory_space<vmem>>)
      %cst_74 = arith.constant 0.000000e+00 : f32
      %235 = vector.broadcast %cst_74 : f32 to vector<8x128xf32>
      %c0_75 = arith.constant 0 : index
      %c0_76 = arith.constant 0 : index
      %236 = vector.load %arg11[%c0_75, %c0_76] : memref<8x128xf32, #tpu.memory_space<vmem>>, vector<8x128xf32>
      tpu.vector_store %arg11[%c0_75, %c0_76], %235 {strides = array<i32>} : memref<8x128xf32, #tpu.memory_space<vmem>>, vector<8x128xf32>,
      %cst_77 = arith.constant 0.000000e+00 : f32
      %237 = vector.broadcast %cst_77 : f32 to vector<8x128xf32>
      %c0_78 = arith.constant 0 : index
      %c0_79 = arith.constant 0 : index
      %238 = vector.load %arg12[%c0_78, %c0_79] : memref<8x128xf32, #tpu.memory_space<vmem>>, vector<8x128xf32>
      tpu.vector_store %arg12[%c0_78, %c0_79], %237 {strides = array<i32>} : memref<8x128xf32, #tpu.memory_space<vmem>>, vector<8x128xf32>,
    } else {
    }
    %c0 = arith.constant 0 : index
    %c0_1 = arith.constant 0 : index
    %c0_2 = arith.constant 0 : index
    %3 = vector.load %arg2[%c0, %c0_1, %c0_2] : memref<8x8x128xf32, #tpu.memory_space<vmem>>, vector<8x8x128xf32>
    %4 = vector.shape_cast %3 : vector<8x8x128xf32> to vector<64x128xf32>
    %c0_3 = arith.constant 0 : index
    %c0_4 = arith.constant 0 : index
    %5 = vector.load %arg8[%c0_3, %c0_4] : memref<128x512xf32, #tpu.memory_space<vmem>>, vector<128x512xf32>
    %cst = arith.constant dense<0.000000e+00> : vector<64x512xf32>
    %6 = tpu.matmul %4, %5, %cst {dimension_numbers = #tpu.dot_dimension_numbers<[1], [0], [0], [1], [0, 0, 1, 1], [], []>} : vector<64x128xf32>, vector<128x512xf32>, vector<64x512xf32> -> vector<64x512xf32>
    %c0_5 = arith.constant 0 : index
    %c0_6 = arith.constant 0 : index
    %7 = vector.load %arg5[%c0_5, %c0_6] : memref<1x512xf32, #tpu.memory_space<vmem>>, vector<1x512xf32>
    %8 = vector.broadcast %7 : vector<1x512xf32> to vector<64x512xf32>
    %9 = arith.addf %6, %8 : vector<64x512xf32>
    %c0_7 = arith.constant 0 : index
    %c0_8 = arith.constant 0 : index
    %10 = vector.load %arg10[%c0_7, %c0_8] : memref<64x512xf32, #tpu.memory_space<vmem>>, vector<64x512xf32>
    tpu.vector_store %arg10[%c0_7, %c0_8], %9 {strides = array<i32>} : memref<64x512xf32, #tpu.memory_space<vmem>>, vector<64x512xf32>,
    %c0_9 = arith.constant 0 : index
    %c0_10 = arith.constant 0 : index
    %11 = vector.load %arg9[%c0_9, %c0_10] : memref<128x512xf32, #tpu.memory_space<vmem>>, vector<128x512xf32>
    %c0_11 = arith.constant 0 : index
    %c0_12 = arith.constant 0 : index
    %12 = vector.load %arg11[%c0_11, %c0_12] : memref<8x128xf32, #tpu.memory_space<vmem>>, vector<8x128xf32>
    %c0_13 = arith.constant 0 : index
    %c0_14 = arith.constant 0 : index
    %13 = vector.load %arg12[%c0_13, %c0_14] : memref<8x128xf32, #tpu.memory_space<vmem>>, vector<8x128xf32>
    %c0_i32_15 = arith.constant 0 : i32
    %c8_i32 = arith.constant 8 : i32
    %14 = arith.muli %c0_i32_15, %c8_i32 : i32
    %15 = tpu.assume_multiple %14, 8 : i32
    %16 = arith.index_cast %15 : i32 to index
    %c0_16 = arith.constant 0 : index
    %17 = vector.load %arg10[%16, %c0_16] : memref<64x512xf32, #tpu.memory_space<vmem>>, vector<8x512xf32>
    %cst_17 = arith.constant dense<0.000000e+00> : vector<8x512xf32>
    %18 = tpu.matmul %12, %11, %cst_17 {dimension_numbers = #tpu.dot_dimension_numbers<[1], [0], [0], [1], [0, 0, 1, 1], [], []>} : vector<8x128xf32>, vector<128x512xf32>, vector<8x512xf32> -> vector<8x512xf32>
    %19 = arith.addf %17, %18 : vector<8x512xf32>
    %20 = vector.extract_strided_slice %19 {offsets = [0, 0], sizes = [8, 384], strides = [1, 1]} : vector<8x512xf32> to vector<8x384xf32>
    %21 = arith.negf %20 : vector<8x384xf32>
    %22 = math.exp %21 : vector<8x384xf32>
    %cst_18 = arith.constant 1.000000e+00 : f32
    %23 = vector.broadcast %cst_18 : f32 to vector<8x384xf32>
    %24 = arith.addf %23, %22 : vector<8x384xf32>
    %25 = arith.divf %23, %24 : vector<8x384xf32>
    %26 = vector.extract_strided_slice %25 {offsets = [0, 0], sizes = [8, 128], strides = [1, 1]} : vector<8x384xf32> to vector<8x128xf32>
    %27 = vector.extract_strided_slice %25 {offsets = [0, 128], sizes = [8, 128], strides = [1, 1]} : vector<8x384xf32> to vector<8x128xf32>
    %28 = vector.extract_strided_slice %25 {offsets = [0, 256], sizes = [8, 128], strides = [1, 1]} : vector<8x384xf32> to vector<8x128xf32>
    %29 = vector.extract_strided_slice %19 {offsets = [0, 384], sizes = [8, 128], strides = [1, 1]} : vector<8x512xf32> to vector<8x128xf32>
    %30 = math.tanh %29 : vector<8x128xf32>
    %31 = arith.mulf %27, %13 : vector<8x128xf32>
    %32 = arith.mulf %26, %30 : vector<8x128xf32>
    %33 = arith.addf %31, %32 : vector<8x128xf32>
    %34 = math.tanh %33 : vector<8x128xf32>
    %35 = arith.mulf %28, %34 : vector<8x128xf32>
    %36 = arith.index_cast %c0_i32_15 : i32 to index
    %c0_19 = arith.constant 0 : index
    %c0_20 = arith.constant 0 : index
    %37 = vector.load %arg6[%36, %c0_19, %c0_20] : memref<8x8x128xf32, #tpu.memory_space<vmem>>, vector<1x8x128xf32>
    %38 = vector.shape_cast %37 : vector<1x8x128xf32> to vector<8x128xf32>
    %39 = vector.shape_cast %35 : vector<8x128xf32> to vector<1x8x128xf32>
    tpu.vector_store %arg6[%36, %c0_19, %c0_20], %39 {strides = array<i32>} : memref<8x8x128xf32, #tpu.memory_space<vmem>>, vector<1x8x128xf32>,
    %c1_i32 = arith.constant 1 : i32
    %c8_i32_21 = arith.constant 8 : i32
    %40 = arith.muli %c1_i32, %c8_i32_21 : i32
    %41 = tpu.assume_multiple %40, 8 : i32
    %42 = arith.index_cast %41 : i32 to index
    %c0_22 = arith.constant 0 : index
    %43 = vector.load %arg10[%42, %c0_22] : memref<64x512xf32, #tpu.memory_space<vmem>>, vector<8x512xf32>
    %cst_23 = arith.constant dense<0.000000e+00> : vector<8x512xf32>
    %44 = tpu.matmul %35, %11, %cst_23 {dimension_numbers = #tpu.dot_dimension_numbers<[1], [0], [0], [1], [0, 0, 1, 1], [], []>} : vector<8x128xf32>, vector<128x512xf32>, vector<8x512xf32> -> vector<8x512xf32>
    %45 = arith.addf %43, %44 : vector<8x512xf32>
    %46 = vector.extract_strided_slice %45 {offsets = [0, 0], sizes = [8, 384], strides = [1, 1]} : vector<8x512xf32> to vector<8x384xf32>
    %47 = arith.negf %46 : vector<8x384xf32>
    %48 = math.exp %47 : vector<8x384xf32>
    %cst_24 = arith.constant 1.000000e+00 : f32
    %49 = vector.broadcast %cst_24 : f32 to vector<8x384xf32>
    %50 = arith.addf %49, %48 : vector<8x384xf32>
    %51 = arith.divf %49, %50 : vector<8x384xf32>
    %52 = vector.extract_strided_slice %51 {offsets = [0, 0], sizes = [8, 128], strides = [1, 1]} : vector<8x384xf32> to vector<8x128xf32>
    %53 = vector.extract_strided_slice %51 {offsets = [0, 128], sizes = [8, 128], strides = [1, 1]} : vector<8x384xf32> to vector<8x128xf32>
    %54 = vector.extract_strided_slice %51 {offsets = [0, 256], sizes = [8, 128], strides = [1, 1]} : vector<8x384xf32> to vector<8x128xf32>
    %55 = vector.extract_strided_slice %45 {offsets = [0, 384], sizes = [8, 128], strides = [1, 1]} : vector<8x512xf32> to vector<8x128xf32>
    %56 = math.tanh %55 : vector<8x128xf32>
    %57 = arith.mulf %53, %33 : vector<8x128xf32>
    %58 = arith.mulf %52, %56 : vector<8x128xf32>
    %59 = arith.addf %57, %58 : vector<8x128xf32>
    %60 = math.tanh %59 : vector<8x128xf32>
    %61 = arith.mulf %54, %60 : vector<8x128xf32>
    %62 = arith.index_cast %c1_i32 : i32 to index
    %c0_25 = arith.constant 0 : index
    %c0_26 = arith.constant 0 : index
    %63 = vector.load %arg6[%62, %c0_25, %c0_26] : memref<8x8x128xf32, #tpu.memory_space<vmem>>, vector<1x8x128xf32>
    %64 = vector.shape_cast %63 : vector<1x8x128xf32> to vector<8x128xf32>
    %65 = vector.shape_cast %61 : vector<8x128xf32> to vector<1x8x128xf32>
    tpu.vector_store %arg6[%62, %c0_25, %c0_26], %65 {strides = array<i32>} : memref<8x8x128xf32, #tpu.memory_space<vmem>>, vector<1x8x128xf32>,
    %c2_i32 = arith.constant 2 : i32
    %c8_i32_27 = arith.constant 8 : i32
    %66 = arith.muli %c2_i32, %c8_i32_27 : i32
    %67 = tpu.assume_multiple %66, 8 : i32
    %68 = arith.index_cast %67 : i32 to index
    %c0_28 = arith.constant 0 : index
    %69 = vector.load %arg10[%68, %c0_28] : memref<64x512xf32, #tpu.memory_space<vmem>>, vector<8x512xf32>
    %cst_29 = arith.constant dense<0.000000e+00> : vector<8x512xf32>
    %70 = tpu.matmul %61, %11, %cst_29 {dimension_numbers = #tpu.dot_dimension_numbers<[1], [0], [0], [1], [0, 0, 1, 1], [], []>} : vector<8x128xf32>, vector<128x512xf32>, vector<8x512xf32> -> vector<8x512xf32>
    %71 = arith.addf %69, %70 : vector<8x512xf32>
    %72 = vector.extract_strided_slice %71 {offsets = [0, 0], sizes = [8, 384], strides = [1, 1]} : vector<8x512xf32> to vector<8x384xf32>
    %73 = arith.negf %72 : vector<8x384xf32>
    %74 = math.exp %73 : vector<8x384xf32>
    %cst_30 = arith.constant 1.000000e+00 : f32
    %75 = vector.broadcast %cst_30 : f32 to vector<8x384xf32>
    %76 = arith.addf %75, %74 : vector<8x384xf32>
    %77 = arith.divf %75, %76 : vector<8x384xf32>
    %78 = vector.extract_strided_slice %77 {offsets = [0, 0], sizes = [8, 128], strides = [1, 1]} : vector<8x384xf32> to vector<8x128xf32>
    %79 = vector.extract_strided_slice %77 {offsets = [0, 128], sizes = [8, 128], strides = [1, 1]} : vector<8x384xf32> to vector<8x128xf32>
    %80 = vector.extract_strided_slice %77 {offsets = [0, 256], sizes = [8, 128], strides = [1, 1]} : vector<8x384xf32> to vector<8x128xf32>
    %81 = vector.extract_strided_slice %71 {offsets = [0, 384], sizes = [8, 128], strides = [1, 1]} : vector<8x512xf32> to vector<8x128xf32>
    %82 = math.tanh %81 : vector<8x128xf32>
    %83 = arith.mulf %79, %59 : vector<8x128xf32>
    %84 = arith.mulf %78, %82 : vector<8x128xf32>
    %85 = arith.addf %83, %84 : vector<8x128xf32>
    %86 = math.tanh %85 : vector<8x128xf32>
    %87 = arith.mulf %80, %86 : vector<8x128xf32>
    %88 = arith.index_cast %c2_i32 : i32 to index
    %c0_31 = arith.constant 0 : index
    %c0_32 = arith.constant 0 : index
    %89 = vector.load %arg6[%88, %c0_31, %c0_32] : memref<8x8x128xf32, #tpu.memory_space<vmem>>, vector<1x8x128xf32>
    %90 = vector.shape_cast %89 : vector<1x8x128xf32> to vector<8x128xf32>
    %91 = vector.shape_cast %87 : vector<8x128xf32> to vector<1x8x128xf32>
    tpu.vector_store %arg6[%88, %c0_31, %c0_32], %91 {strides = array<i32>} : memref<8x8x128xf32, #tpu.memory_space<vmem>>, vector<1x8x128xf32>,
    %c3_i32 = arith.constant 3 : i32
    %c8_i32_33 = arith.constant 8 : i32
    %92 = arith.muli %c3_i32, %c8_i32_33 : i32
    %93 = tpu.assume_multiple %92, 8 : i32
    %94 = arith.index_cast %93 : i32 to index
    %c0_34 = arith.constant 0 : index
    %95 = vector.load %arg10[%94, %c0_34] : memref<64x512xf32, #tpu.memory_space<vmem>>, vector<8x512xf32>
    %cst_35 = arith.constant dense<0.000000e+00> : vector<8x512xf32>
    %96 = tpu.matmul %87, %11, %cst_35 {dimension_numbers = #tpu.dot_dimension_numbers<[1], [0], [0], [1], [0, 0, 1, 1], [], []>} : vector<8x128xf32>, vector<128x512xf32>, vector<8x512xf32> -> vector<8x512xf32>
    %97 = arith.addf %95, %96 : vector<8x512xf32>
    %98 = vector.extract_strided_slice %97 {offsets = [0, 0], sizes = [8, 384], strides = [1, 1]} : vector<8x512xf32> to vector<8x384xf32>
    %99 = arith.negf %98 : vector<8x384xf32>
    %100 = math.exp %99 : vector<8x384xf32>
    %cst_36 = arith.constant 1.000000e+00 : f32
    %101 = vector.broadcast %cst_36 : f32 to vector<8x384xf32>
    %102 = arith.addf %101, %100 : vector<8x384xf32>
    %103 = arith.divf %101, %102 : vector<8x384xf32>
    %104 = vector.extract_strided_slice %103 {offsets = [0, 0], sizes = [8, 128], strides = [1, 1]} : vector<8x384xf32> to vector<8x128xf32>
    %105 = vector.extract_strided_slice %103 {offsets = [0, 128], sizes = [8, 128], strides = [1, 1]} : vector<8x384xf32> to vector<8x128xf32>
    %106 = vector.extract_strided_slice %103 {offsets = [0, 256], sizes = [8, 128], strides = [1, 1]} : vector<8x384xf32> to vector<8x128xf32>
    %107 = vector.extract_strided_slice %97 {offsets = [0, 384], sizes = [8, 128], strides = [1, 1]} : vector<8x512xf32> to vector<8x128xf32>
    %108 = math.tanh %107 : vector<8x128xf32>
    %109 = arith.mulf %105, %85 : vector<8x128xf32>
    %110 = arith.mulf %104, %108 : vector<8x128xf32>
    %111 = arith.addf %109, %110 : vector<8x128xf32>
    %112 = math.tanh %111 : vector<8x128xf32>
    %113 = arith.mulf %106, %112 : vector<8x128xf32>
    %114 = arith.index_cast %c3_i32 : i32 to index
    %c0_37 = arith.constant 0 : index
    %c0_38 = arith.constant 0 : index
    %115 = vector.load %arg6[%114, %c0_37, %c0_38] : memref<8x8x128xf32, #tpu.memory_space<vmem>>, vector<1x8x128xf32>
    %116 = vector.shape_cast %115 : vector<1x8x128xf32> to vector<8x128xf32>
    %117 = vector.shape_cast %113 : vector<8x128xf32> to vector<1x8x128xf32>
    tpu.vector_store %arg6[%114, %c0_37, %c0_38], %117 {strides = array<i32>} : memref<8x8x128xf32, #tpu.memory_space<vmem>>, vector<1x8x128xf32>,
    %c4_i32 = arith.constant 4 : i32
    %c8_i32_39 = arith.constant 8 : i32
    %118 = arith.muli %c4_i32, %c8_i32_39 : i32
    %119 = tpu.assume_multiple %118, 8 : i32
    %120 = arith.index_cast %119 : i32 to index
    %c0_40 = arith.constant 0 : index
    %121 = vector.load %arg10[%120, %c0_40] : memref<64x512xf32, #tpu.memory_space<vmem>>, vector<8x512xf32>
    %cst_41 = arith.constant dense<0.000000e+00> : vector<8x512xf32>
    %122 = tpu.matmul %113, %11, %cst_41 {dimension_numbers = #tpu.dot_dimension_numbers<[1], [0], [0], [1], [0, 0, 1, 1], [], []>} : vector<8x128xf32>, vector<128x512xf32>, vector<8x512xf32> -> vector<8x512xf32>
    %123 = arith.addf %121, %122 : vector<8x512xf32>
    %124 = vector.extract_strided_slice %123 {offsets = [0, 0], sizes = [8, 384], strides = [1, 1]} : vector<8x512xf32> to vector<8x384xf32>
    %125 = arith.negf %124 : vector<8x384xf32>
    %126 = math.exp %125 : vector<8x384xf32>
    %cst_42 = arith.constant 1.000000e+00 : f32
    %127 = vector.broadcast %cst_42 : f32 to vector<8x384xf32>
    %128 = arith.addf %127, %126 : vector<8x384xf32>
    %129 = arith.divf %127, %128 : vector<8x384xf32>
    %130 = vector.extract_strided_slice %129 {offsets = [0, 0], sizes = [8, 128], strides = [1, 1]} : vector<8x384xf32> to vector<8x128xf32>
    %131 = vector.extract_strided_slice %129 {offsets = [0, 128], sizes = [8, 128], strides = [1, 1]} : vector<8x384xf32> to vector<8x128xf32>
    %132 = vector.extract_strided_slice %129 {offsets = [0, 256], sizes = [8, 128], strides = [1, 1]} : vector<8x384xf32> to vector<8x128xf32>
    %133 = vector.extract_strided_slice %123 {offsets = [0, 384], sizes = [8, 128], strides = [1, 1]} : vector<8x512xf32> to vector<8x128xf32>
    %134 = math.tanh %133 : vector<8x128xf32>
    %135 = arith.mulf %131, %111 : vector<8x128xf32>
    %136 = arith.mulf %130, %134 : vector<8x128xf32>
    %137 = arith.addf %135, %136 : vector<8x128xf32>
    %138 = math.tanh %137 : vector<8x128xf32>
    %139 = arith.mulf %132, %138 : vector<8x128xf32>
    %140 = arith.index_cast %c4_i32 : i32 to index
    %c0_43 = arith.constant 0 : index
    %c0_44 = arith.constant 0 : index
    %141 = vector.load %arg6[%140, %c0_43, %c0_44] : memref<8x8x128xf32, #tpu.memory_space<vmem>>, vector<1x8x128xf32>
    %142 = vector.shape_cast %141 : vector<1x8x128xf32> to vector<8x128xf32>
    %143 = vector.shape_cast %139 : vector<8x128xf32> to vector<1x8x128xf32>
    tpu.vector_store %arg6[%140, %c0_43, %c0_44], %143 {strides = array<i32>} : memref<8x8x128xf32, #tpu.memory_space<vmem>>, vector<1x8x128xf32>,
    %c5_i32 = arith.constant 5 : i32
    %c8_i32_45 = arith.constant 8 : i32
    %144 = arith.muli %c5_i32, %c8_i32_45 : i32
    %145 = tpu.assume_multiple %144, 8 : i32
    %146 = arith.index_cast %145 : i32 to index
    %c0_46 = arith.constant 0 : index
    %147 = vector.load %arg10[%146, %c0_46] : memref<64x512xf32, #tpu.memory_space<vmem>>, vector<8x512xf32>
    %cst_47 = arith.constant dense<0.000000e+00> : vector<8x512xf32>
    %148 = tpu.matmul %139, %11, %cst_47 {dimension_numbers = #tpu.dot_dimension_numbers<[1], [0], [0], [1], [0, 0, 1, 1], [], []>} : vector<8x128xf32>, vector<128x512xf32>, vector<8x512xf32> -> vector<8x512xf32>
    %149 = arith.addf %147, %148 : vector<8x512xf32>
    %150 = vector.extract_strided_slice %149 {offsets = [0, 0], sizes = [8, 384], strides = [1, 1]} : vector<8x512xf32> to vector<8x384xf32>
    %151 = arith.negf %150 : vector<8x384xf32>
    %152 = math.exp %151 : vector<8x384xf32>
    %cst_48 = arith.constant 1.000000e+00 : f32
    %153 = vector.broadcast %cst_48 : f32 to vector<8x384xf32>
    %154 = arith.addf %153, %152 : vector<8x384xf32>
    %155 = arith.divf %153, %154 : vector<8x384xf32>
    %156 = vector.extract_strided_slice %155 {offsets = [0, 0], sizes = [8, 128], strides = [1, 1]} : vector<8x384xf32> to vector<8x128xf32>
    %157 = vector.extract_strided_slice %155 {offsets = [0, 128], sizes = [8, 128], strides = [1, 1]} : vector<8x384xf32> to vector<8x128xf32>
    %158 = vector.extract_strided_slice %155 {offsets = [0, 256], sizes = [8, 128], strides = [1, 1]} : vector<8x384xf32> to vector<8x128xf32>
    %159 = vector.extract_strided_slice %149 {offsets = [0, 384], sizes = [8, 128], strides = [1, 1]} : vector<8x512xf32> to vector<8x128xf32>
    %160 = math.tanh %159 : vector<8x128xf32>
    %161 = arith.mulf %157, %137 : vector<8x128xf32>
    %162 = arith.mulf %156, %160 : vector<8x128xf32>
    %163 = arith.addf %161, %162 : vector<8x128xf32>
    %164 = math.tanh %163 : vector<8x128xf32>
    %165 = arith.mulf %158, %164 : vector<8x128xf32>
    %166 = arith.index_cast %c5_i32 : i32 to index
    %c0_49 = arith.constant 0 : index
    %c0_50 = arith.constant 0 : index
    %167 = vector.load %arg6[%166, %c0_49, %c0_50] : memref<8x8x128xf32, #tpu.memory_space<vmem>>, vector<1x8x128xf32>
    %168 = vector.shape_cast %167 : vector<1x8x128xf32> to vector<8x128xf32>
    %169 = vector.shape_cast %165 : vector<8x128xf32> to vector<1x8x128xf32>
    tpu.vector_store %arg6[%166, %c0_49, %c0_50], %169 {strides = array<i32>} : memref<8x8x128xf32, #tpu.memory_space<vmem>>, vector<1x8x128xf32>,
    %c6_i32 = arith.constant 6 : i32
    %c8_i32_51 = arith.constant 8 : i32
    %170 = arith.muli %c6_i32, %c8_i32_51 : i32
    %171 = tpu.assume_multiple %170, 8 : i32
    %172 = arith.index_cast %171 : i32 to index
    %c0_52 = arith.constant 0 : index
    %173 = vector.load %arg10[%172, %c0_52] : memref<64x512xf32, #tpu.memory_space<vmem>>, vector<8x512xf32>
    %cst_53 = arith.constant dense<0.000000e+00> : vector<8x512xf32>
    %174 = tpu.matmul %165, %11, %cst_53 {dimension_numbers = #tpu.dot_dimension_numbers<[1], [0], [0], [1], [0, 0, 1, 1], [], []>} : vector<8x128xf32>, vector<128x512xf32>, vector<8x512xf32> -> vector<8x512xf32>
    %175 = arith.addf %173, %174 : vector<8x512xf32>
    %176 = vector.extract_strided_slice %175 {offsets = [0, 0], sizes = [8, 384], strides = [1, 1]} : vector<8x512xf32> to vector<8x384xf32>
    %177 = arith.negf %176 : vector<8x384xf32>
    %178 = math.exp %177 : vector<8x384xf32>
    %cst_54 = arith.constant 1.000000e+00 : f32
    %179 = vector.broadcast %cst_54 : f32 to vector<8x384xf32>
    %180 = arith.addf %179, %178 : vector<8x384xf32>
    %181 = arith.divf %179, %180 : vector<8x384xf32>
    %182 = vector.extract_strided_slice %181 {offsets = [0, 0], sizes = [8, 128], strides = [1, 1]} : vector<8x384xf32> to vector<8x128xf32>
    %183 = vector.extract_strided_slice %181 {offsets = [0, 128], sizes = [8, 128], strides = [1, 1]} : vector<8x384xf32> to vector<8x128xf32>
    %184 = vector.extract_strided_slice %181 {offsets = [0, 256], sizes = [8, 128], strides = [1, 1]} : vector<8x384xf32> to vector<8x128xf32>
    %185 = vector.extract_strided_slice %175 {offsets = [0, 384], sizes = [8, 128], strides = [1, 1]} : vector<8x512xf32> to vector<8x128xf32>
    %186 = math.tanh %185 : vector<8x128xf32>
    %187 = arith.mulf %183, %163 : vector<8x128xf32>
    %188 = arith.mulf %182, %186 : vector<8x128xf32>
    %189 = arith.addf %187, %188 : vector<8x128xf32>
    %190 = math.tanh %189 : vector<8x128xf32>
    %191 = arith.mulf %184, %190 : vector<8x128xf32>
    %192 = arith.index_cast %c6_i32 : i32 to index
    %c0_55 = arith.constant 0 : index
    %c0_56 = arith.constant 0 : index
    %193 = vector.load %arg6[%192, %c0_55, %c0_56] : memref<8x8x128xf32, #tpu.memory_space<vmem>>, vector<1x8x128xf32>
    %194 = vector.shape_cast %193 : vector<1x8x128xf32> to vector<8x128xf32>
    %195 = vector.shape_cast %191 : vector<8x128xf32> to vector<1x8x128xf32>
    tpu.vector_store %arg6[%192, %c0_55, %c0_56], %195 {strides = array<i32>} : memref<8x8x128xf32, #tpu.memory_space<vmem>>, vector<1x8x128xf32>,
    %c7_i32 = arith.constant 7 : i32
    %c8_i32_57 = arith.constant 8 : i32
    %196 = arith.muli %c7_i32, %c8_i32_57 : i32
    %197 = tpu.assume_multiple %196, 8 : i32
    %198 = arith.index_cast %197 : i32 to index
    %c0_58 = arith.constant 0 : index
    %199 = vector.load %arg10[%198, %c0_58] : memref<64x512xf32, #tpu.memory_space<vmem>>, vector<8x512xf32>
    %cst_59 = arith.constant dense<0.000000e+00> : vector<8x512xf32>
    %200 = tpu.matmul %191, %11, %cst_59 {dimension_numbers = #tpu.dot_dimension_numbers<[1], [0], [0], [1], [0, 0, 1, 1], [], []>} : vector<8x128xf32>, vector<128x512xf32>, vector<8x512xf32> -> vector<8x512xf32>
    %201 = arith.addf %199, %200 : vector<8x512xf32>
    %202 = vector.extract_strided_slice %201 {offsets = [0, 0], sizes = [8, 384], strides = [1, 1]} : vector<8x512xf32> to vector<8x384xf32>
    %203 = arith.negf %202 : vector<8x384xf32>
    %204 = math.exp %203 : vector<8x384xf32>
    %cst_60 = arith.constant 1.000000e+00 : f32
    %205 = vector.broadcast %cst_60 : f32 to vector<8x384xf32>
    %206 = arith.addf %205, %204 : vector<8x384xf32>
    %207 = arith.divf %205, %206 : vector<8x384xf32>
    %208 = vector.extract_strided_slice %207 {offsets = [0, 0], sizes = [8, 128], strides = [1, 1]} : vector<8x384xf32> to vector<8x128xf32>
    %209 = vector.extract_strided_slice %207 {offsets = [0, 128], sizes = [8, 128], strides = [1, 1]} : vector<8x384xf32> to vector<8x128xf32>
    %210 = vector.extract_strided_slice %207 {offsets = [0, 256], sizes = [8, 128], strides = [1, 1]} : vector<8x384xf32> to vector<8x128xf32>
    %211 = vector.extract_strided_slice %201 {offsets = [0, 384], sizes = [8, 128], strides = [1, 1]} : vector<8x512xf32> to vector<8x128xf32>
    %212 = math.tanh %211 : vector<8x128xf32>
    %213 = arith.mulf %209, %189 : vector<8x128xf32>
    %214 = arith.mulf %208, %212 : vector<8x128xf32>
    %215 = arith.addf %213, %214 : vector<8x128xf32>
    %216 = math.tanh %215 : vector<8x128xf32>
    %217 = arith.mulf %210, %216 : vector<8x128xf32>
    %218 = arith.index_cast %c7_i32 : i32 to index
    %c0_61 = arith.constant 0 : index
    %c0_62 = arith.constant 0 : index
    %219 = vector.load %arg6[%218, %c0_61, %c0_62] : memref<8x8x128xf32, #tpu.memory_space<vmem>>, vector<1x8x128xf32>
    %220 = vector.shape_cast %219 : vector<1x8x128xf32> to vector<8x128xf32>
    %221 = vector.shape_cast %217 : vector<8x128xf32> to vector<1x8x128xf32>
    tpu.vector_store %arg6[%218, %c0_61, %c0_62], %221 {strides = array<i32>} : memref<8x8x128xf32, #tpu.memory_space<vmem>>, vector<1x8x128xf32>,
    %c8_i32_63 = arith.constant 8 : i32
    %c0_64 = arith.constant 0 : index
    %c0_65 = arith.constant 0 : index
    %222 = vector.load %arg11[%c0_64, %c0_65] : memref<8x128xf32, #tpu.memory_space<vmem>>, vector<8x128xf32>
    tpu.vector_store %arg11[%c0_64, %c0_65], %217 {strides = array<i32>} : memref<8x128xf32, #tpu.memory_space<vmem>>, vector<8x128xf32>,
    %c0_66 = arith.constant 0 : index
    %c0_67 = arith.constant 0 : index
    %223 = vector.load %arg12[%c0_66, %c0_67] : memref<8x128xf32, #tpu.memory_space<vmem>>, vector<8x128xf32>
    tpu.vector_store %arg12[%c0_66, %c0_67], %215 {strides = array<i32>} : memref<8x128xf32, #tpu.memory_space<vmem>>, vector<8x128xf32>,
    %c0_i32_68 = arith.constant 0 : i32
    %224 = arith.cmpi eq, %arg1, %c0_i32_68 : i32
    %225 = arith.extui %224 : i1 to i32
    %c0_i32_69 = arith.constant 0 : i32
    %226 = arith.cmpi ne, %225, %c0_i32_69 : i32
    scf.if %226 {
      %c0_70 = arith.constant 0 : index
      %c0_71 = arith.constant 0 : index
      %227 = vector.load %arg7[%c0_70, %c0_71] : memref<8x128xf32, #tpu.memory_space<vmem>>, vector<8x128xf32>
      tpu.vector_store %arg7[%c0_70, %c0_71], %215 {strides = array<i32>} : memref<8x128xf32, #tpu.memory_space<vmem>>, vector<8x128xf32>,
    } else {
    }
    return
  }
  func.func @transform_0(%arg0: i32, %arg1: i32) -> (i32, i32, i32) {
    %c0_i32 = arith.constant 0 : i32
    %c0_i32_0 = arith.constant 0 : i32
    return %arg1, %arg0, %c0_i32 : i32, i32, i32
  }
  func.func @transform_3(%arg0: i32, %arg1: i32) -> (i32, i32) {
    %c0_i32 = arith.constant 0 : i32
    %c0_i32_0 = arith.constant 0 : i32
    %c0_i32_1 = arith.constant 0 : i32
    return %c0_i32, %c0_i32_0 : i32, i32
  }
  func.func @transform_4(%arg0: i32, %arg1: i32) -> (i32, i32, i32) {
    %c0_i32 = arith.constant 0 : i32
    %c0_i32_0 = arith.constant 0 : i32
    return %arg1, %arg0, %c0_i32 : i32, i32, i32
  }
  func.func @transform_5(%arg0: i32, %arg1: i32) -> (i32, i32) {
    %c0_i32 = arith.constant 0 : i32
    %c0_i32_0 = arith.constant 0 : i32
    return %arg0, %c0_i32 : i32, i32
  }
}

</mosaic_0001>

<bundles_post_ra>
// kernel: tpu_custom_call.1
= control target key start
LH: loop header
LB: loop body
LE: loop exit
PB: predicated region body
PF: predicated region fallthrough
CT: control target
= control target key end

     0   :  { %11 = vsyncpa [#allocation9], 0  ;;  %s3312_s0 = inlined_call_operand.hbm [shape: f32[8,8,128], index: 0, kind: input, shape index: {}]   ;;  %s3313_s1 = inlined_call_operand.hbm [shape: f32[128,512], index: 1, kind: input, shape index: {}]   ;;  %s3314_s2 = inlined_call_operand.hbm [shape: f32[128,512], index: 2, kind: input, shape index: {}]   ;;  %s3315_s3 = inlined_call_operand.vmem [shape: f32[1,512], index: 3, kind: input, shape index: {}]   ;;  %s3316_s4 = inlined_call_operand.hbm [shape: f32[8,8,128], index: 4, kind: output, shape index: {0}]   ;;  %s3317_s5 = inlined_call_operand.hbm [shape: f32[8,128], index: 5, kind: output, shape index: {1}]  }
   0x1   :  { %12 = vsyncpa [#allocation10], 0 }
   0x2   :  { %13 = vsyncpa [#allocation13], 0  ;;  %s2308_s18 = smov [#allocation8]  }
   0x3   :  { %s19_s19 = sshll.u32 %s2308_s18, 4  ;;  %s20_s19 = int_to_ptr.vmem [resolvable:$true] %s19_s19 }
   0x4   :  { %s2206_s20 = scalar_lea.vmem %s20_s19, 1024  ;;  %p2211_p1 = scmp.lt.s32.totalorder %s20_s19, %s20_s19 }
   0x5   :  { %p2207_p0 = scmp.ne.s32.totalorder %s20_s19, %s2206_s20  ;;  %p2212_p2 = scmp.lt.s32.totalorder %s2206_s20, %s2206_s20 }
   0x7   :  { %p2213_p3 = por %p2212_p2, %p2211_p1 }
   0x9   :  { %p2214_p4 = pnand %p2213_p3, %p2207_p0 }
   0xb   :  { %2217 = shalt.err (!%p2214_p4)
}
   0xc   :  { %s2309_s21 = smov 128   ;;  %s2310_s22 = smov 8  }
   0xd   :  { %25 = dma.hbm_to_vmem [thread:$0]  %s3312_s0, 1024, %s20_s19, [#allocation9], %s2309_s21, %s2309_s21, %s2310_s22  }
   0xe   :  { %2298 = dma.done.wait [#allocation9], 1024  }
   0xf   :  { %2299 = vsyncadd [#allocation9], 4294966272  ;;  %s2311_s25 = smov [#allocation2]   ;;  %s2312_s27 = smov [#allocation3]  }
  0x10   :  { %s42_s26 = sshll.u32 %s2311_s25, 4  ;;  %s54_s28 = sshll.u32 %s2312_s27, 4  ;;  %s43_s26 = int_to_ptr.vmem [resolvable:$true] %s42_s26  ;;  %s55_s28 = int_to_ptr.vmem [resolvable:$true] %s54_s28 }
  0x11   :  { %s2226_s29 = scalar_lea.vmem %s43_s26, 8192  ;;  %p2231_p6 = scmp.lt.s32.totalorder %s43_s26, %s43_s26 }
  0x12   :  { %p2227_p5 = scmp.ne.s32.totalorder %s43_s26, %s2226_s29  ;;  %p2232_p7 = scmp.lt.s32.totalorder %s2226_s29, %s2226_s29 }
  0x14   :  { %p2233_p8 = por %p2232_p7, %p2231_p6 }
  0x16   :  { %p2234_p9 = pnand %p2233_p8, %p2227_p5 }
  0x18   :  { %2237 = shalt.err (!%p2234_p9)  }
  0x19   :  { %45 = dma.hbm_to_vmem [thread:$0]  %s3313_s1, 8192, %s43_s26, [#allocation7] }
  0x1a   :  { %s2246_s0 = scalar_lea.vmem %s55_s28, 8192  ;;  %p2251_p11 = scmp.lt.s32.totalorder %s55_s28, %s55_s28 }
  0x1b   :  { %p2247_p10 = scmp.ne.s32.totalorder %s55_s28, %s2246_s0  ;;  %p2252_p12 = scmp.lt.s32.totalorder %s2246_s0, %s2246_s0 }
  0x1d   :  { %p2253_p13 = por %p2252_p12, %p2251_p11 }
  0x1f   :  { %p2254_p0 = pnand %p2253_p13, %p2247_p10 }
  0x21   :  { %2257 = shalt.err (!%p2254_p0)  }
  0x22   :  { %57 = dma.hbm_to_vmem [thread:$0]  %s3314_s2, 8192, %s55_s28, [#allocation7 + $0x1] }
  0x23   :  { %2300 = dma.done.wait [#allocation7], 8192 }
  0x24   :  { %2301 = vsyncadd [#allocation7], 4294959104 }
  0x25   :  { %2302 = dma.done.wait [#allocation7 + $0x1], 8192 }
  0x26   :  { %2303 = vsyncadd [#allocation7 + $0x1], 4294959104  ;;  %v3318_v0 = vmov 0.0   ;;  %v135_v1 = vld [vmem:[#allocation2 + $0x1e8] sm:$0xff]  ;;  %v137_v2 = vld [vmem:[#allocation2 + $0x1f8] sm:$0xff] }
  0x27   :  { %224 = vmatprep.mubr.f32.mxu0 %v3318_v0  ;;  %337 = vmatprep.mubr.f32.mxu1 %v3318_v0  ;;  %v134_v3 = vld [vmem:[#allocation2 + $0x1e0] sm:$0xff]  ;;  %v136_v4 = vld [vmem:[#allocation2 + $0x1f0] sm:$0xff]  ;;  %v131_v5 = vld [vmem:[#allocation2 + $0x1c8] sm:$0xff] }
  0x28   :  { %160 = vmatprep.subr.mxu0 %v135_v1  ;;  %273 = vmatprep.subr.mxu1 %v137_v2  ;;  %v133_v6 = vld [vmem:[#allocation2 + $0x1d8] sm:$0xff]  ;;  %v130_v7 = vld [vmem:[#allocation2 + $0x1c0] sm:$0xff]  ;;  %v132_v8 = vld [vmem:[#allocation2 + $0x1d0] sm:$0xff] }
  0x29   :  { %161 = vmatpush1.msra.mxu0 %v134_v3  ;;  %274 = vmatpush1.msra.mxu1 %v136_v4  ;;  %v127_v9 = vld [vmem:[#allocation2 + $0x1a8] sm:$0xff]  ;;  %v129_v10 = vld [vmem:[#allocation2 + $0x1b8] sm:$0xff]  ;;  %v126_v11 = vld [vmem:[#allocation2 + $0x1a0] sm:$0xff] }
  0x2a   :  { %162 = vmatprep.subr.mxu0 %v131_v5  ;;  %275 = vmatprep.subr.mxu1 %v133_v6  ;;  %v128_v12 = vld [vmem:[#allocation2 + $0x1b0] sm:$0xff]  ;;  %v123_v13 = vld [vmem:[#allocation2 + $0x188] sm:$0xff]  ;;  %v125_v14 = vld [vmem:[#allocation2 + $0x198] sm:$0xff] }
  0x2b   :  { %163 = vmatpush1.msra.mxu0 %v130_v7  ;;  %276 = vmatpush1.msra.mxu1 %v132_v8  ;;  %v122_v15 = vld [vmem:[#allocation2 + $0x180] sm:$0xff]  ;;  %v124_v16 = vld [vmem:[#allocation2 + $0x190] sm:$0xff]  ;;  %v119_v17 = vld [vmem:[#allocation2 + $0x168] sm:$0xff] }
  0x2c   :  { %164 = vmatprep.subr.mxu0 %v127_v9  ;;  %277 = vmatprep.subr.mxu1 %v129_v10  ;;  %v121_v18 = vld [vmem:[#allocation2 + $0x178] sm:$0xff]  ;;  %v118_v19 = vld [vmem:[#allocation2 + $0x160] sm:$0xff]  ;;  %v120_v20 = vld [vmem:[#allocation2 + $0x170] sm:$0xff] }
  0x2d   :  { %165 = vmatpush1.msra.mxu0 %v126_v11  ;;  %278 = vmatpush1.msra.mxu1 %v128_v12  ;;  %v115_v21 = vld [vmem:[#allocation2 + $0x148] sm:$0xff]  ;;  %v117_v22 = vld [vmem:[#allocation2 + $0x158] sm:$0xff]  ;;  %v114_v23 = vld [vmem:[#allocation2 + $0x140] sm:$0xff] }
  0x2e   :  { %166 = vmatprep.subr.mxu0 %v123_v13  ;;  %279 = vmatprep.subr.mxu1 %v125_v14  ;;  %v116_v24 = vld [vmem:[#allocation2 + $0x150] sm:$0xff]  ;;  %v111_v25 = vld [vmem:[#allocation2 + $0x128] sm:$0xff]  ;;  %v113_v26 = vld [vmem:[#allocation2 + $0x138] sm:$0xff] }
  0x2f   :  { %167 = vmatpush1.msra.mxu0 %v122_v15  ;;  %280 = vmatpush1.msra.mxu1 %v124_v16  ;;  %v110_v27 = vld [vmem:[#allocation2 + $0x120] sm:$0xff]  ;;  %v112_v28 = vld [vmem:[#allocation2 + $0x130] sm:$0xff]  ;;  %v107_v29 = vld [vmem:[#allocation2 + $0x108] sm:$0xff] }
  0x30   :  { %168 = vmatprep.subr.mxu0 %v119_v17  ;;  %281 = vmatprep.subr.mxu1 %v121_v18  ;;  %v109_v30 = vld [vmem:[#allocation2 + $0x118] sm:$0xff]  ;;  %v106_v31 = vld [vmem:[#allocation2 + $0x100] sm:$0xff]  ;;  %v108_v32 = vld [vmem:[#allocation2 + $0x110] sm:$0xff] }
  0x31   :  { %169 = vmatpush1.msra.mxu0 %v118_v19  ;;  %282 = vmatpush1.msra.mxu1 %v120_v20  ;;  %v103_v33 = vld [vmem:[#allocation2 + $0xe8] sm:$0xff]  ;;  %v105_v34 = vld [vmem:[#allocation2 + $0xf8] sm:$0xff]  ;;  %v102_v35 = vld [vmem:[#allocation2 + $0xe0] sm:$0xff] }
  0x32   :  { %170 = vmatprep.subr.mxu0 %v115_v21  ;;  %283 = vmatprep.subr.mxu1 %v117_v22  ;;  %v104_v36 = vld [vmem:[#allocation2 + $0xf0] sm:$0xff]  ;;  %v99_v37 = vld [vmem:[#allocation2 + $0xc8] sm:$0xff]  ;;  %v101_v38 = vld [vmem:[#allocation2 + $0xd8] sm:$0xff] }
  0x33   :  { %171 = vmatpush1.msra.mxu0 %v114_v23  ;;  %284 = vmatpush1.msra.mxu1 %v116_v24  ;;  %v98_v39 = vld [vmem:[#allocation2 + $0xc0] sm:$0xff]  ;;  %v100_v40 = vld [vmem:[#allocation2 + $0xd0] sm:$0xff]  ;;  %v95_v41 = vld [vmem:[#allocation2 + $0xa8] sm:$0xff] }
  0x34   :  { %172 = vmatprep.subr.mxu0 %v111_v25  ;;  %285 = vmatprep.subr.mxu1 %v113_v26  ;;  %v97_v42 = vld [vmem:[#allocation2 + $0xb8] sm:$0xff]  ;;  %v94_v43 = vld [vmem:[#allocation2 + $0xa0] sm:$0xff]  ;;  %v96_v44 = vld [vmem:[#allocation2 + $0xb0] sm:$0xff] }
  0x35   :  { %173 = vmatpush1.msra.mxu0 %v110_v27  ;;  %286 = vmatpush1.msra.mxu1 %v112_v28  ;;  %v91_v45 = vld [vmem:[#allocation2 + $0x88] sm:$0xff]  ;;  %v93_v46 = vld [vmem:[#allocation2 + $0x98] sm:$0xff]  ;;  %v90_v47 = vld [vmem:[#allocation2 + $0x80] sm:$0xff] }
  0x36   :  { %174 = vmatprep.subr.mxu0 %v107_v29  ;;  %287 = vmatprep.subr.mxu1 %v109_v30  ;;  %v92_v48 = vld [vmem:[#allocation2 + $0x90] sm:$0xff]  ;;  %v87_v49 = vld [vmem:[#allocation2 + $0x68] sm:$0xff]  ;;  %v89_v50 = vld [vmem:[#allocation2 + $0x78] sm:$0xff] }
  0x37   :  { %175 = vmatpush1.msra.mxu0 %v106_v31  ;;  %288 = vmatpush1.msra.mxu1 %v108_v32  ;;  %v86_v51 = vld [vmem:[#allocation2 + $0x60] sm:$0xff]  ;;  %v88_v52 = vld [vmem:[#allocation2 + $0x70] sm:$0xff]  ;;  %v83_v53 = vld [vmem:[#allocation2 + $0x48] sm:$0xff] }
  0x38   :  { %176 = vmatprep.subr.mxu0 %v103_v33  ;;  %289 = vmatprep.subr.mxu1 %v105_v34  ;;  %v85_v54 = vld [vmem:[#allocation2 + $0x58] sm:$0xff]  ;;  %v82_v55 = vld [vmem:[#allocation2 + $0x40] sm:$0xff]  ;;  %v84_v56 = vld [vmem:[#allocation2 + $0x50] sm:$0xff] }
  0x39   :  { %177 = vmatpush1.msra.mxu0 %v102_v35  ;;  %290 = vmatpush1.msra.mxu1 %v104_v36  ;;  %v79_v57 = vld [vmem:[#allocation2 + $0x28] sm:$0xff]  ;;  %v81_v58 = vld [vmem:[#allocation2 + $0x38] sm:$0xff]  ;;  %v78_v59 = vld [vmem:[#allocation2 + $0x20] sm:$0xff] }
  0x3a   :  { %178 = vmatprep.subr.mxu0 %v99_v37  ;;  %291 = vmatprep.subr.mxu1 %v101_v38  ;;  %v80_v60 = vld [vmem:[#allocation2 + $0x30] sm:$0xff]  ;;  %v75_v61 = vld [vmem:[#allocation2 + $0x8] sm:$0xff]  ;;  %v77_v62 = vld [vmem:[#allocation2 + $0x18] sm:$0xff] }
  0x3b   :  { %179 = vmatpush1.msra.mxu0 %v98_v39  ;;  %292 = vmatpush1.msra.mxu1 %v100_v40  ;;  %v74_v63 = vld [vmem:[#allocation2] sm:$0xff]  ;;  %v76_v1 = vld [vmem:[#allocation2 + $0x10] sm:$0xff]  ;;  %v2360_v3 = vld [vmem:[#allocation3 + $0x1e8] sm:$0xff] }
  0x3c   :  { %180 = vmatprep.subr.mxu0 %v95_v41  ;;  %293 = vmatprep.subr.mxu1 %v97_v42  ;;  %v66_v2 = vld [vmem:[#allocation8] sm:$0xff]  ;;  %3406 = vst [vmem:[#allocation25_spill] sm:$0xff] %v2360_v3  ;;  %v2362_v4 = vld [vmem:[#allocation3 + $0x1f8] sm:$0xff]  ;;  %v2366_v6 = vld [vmem:[#allocation3 + $0x1f0] sm:$0xff] }
  0x3d   :  { %181 = vmatpush1.msra.mxu0 %v94_v43  ;;  %294 = vmatpush1.msra.mxu1 %v96_v44  ;;  %3407 = vst [vmem:[#allocation26_spill] sm:$0xff] %v2362_v4  ;;  %v2364_v5 = vld [vmem:[#allocation3 + $0x1e0] sm:$0xff]  ;;  %v2368_v7 = vld [vmem:[#allocation3 + $0x1c8] sm:$0xff]  ;;  %v2370_v8 = vld [vmem:[#allocation3 + $0x1d8] sm:$0xff] }
  0x3e   :  { %182 = vmatprep.subr.mxu0 %v91_v45  ;;  %295 = vmatprep.subr.mxu1 %v93_v46  ;;  %v2376_v9 = vld [vmem:[#allocation3 + $0x1c0] sm:$0xff]  ;;  %v2378_v10 = vld [vmem:[#allocation3 + $0x1d0] sm:$0xff]  ;;  %v67_v11 = vld [vmem:[#allocation8 + $0x8] sm:$0xff] }
  0x3f   :  { %183 = vmatpush1.msra.mxu0 %v90_v47  ;;  %296 = vmatpush1.msra.mxu1 %v92_v48  ;;  %v2384_v12 = vld [vmem:[#allocation3 + $0x1a8] sm:$0xff]  ;;  %v2386_v13 = vld [vmem:[#allocation3 + $0x1b8] sm:$0xff]  ;;  %v2390_v14 = vld [vmem:[#allocation3 + $0x1a0] sm:$0xff] }
  0x40   :  { %184 = vmatprep.subr.mxu0 %v87_v49  ;;  %297 = vmatprep.subr.mxu1 %v89_v50  ;;  %v2392_v15 = vld [vmem:[#allocation3 + $0x1b0] sm:$0xff]  ;;  %v2394_v16 = vld [vmem:[#allocation3 + $0x188] sm:$0xff]  ;;  %v2396_v17 = vld [vmem:[#allocation3 + $0x198] sm:$0xff] }
  0x41   :  { %185 = vmatpush1.msra.mxu0 %v86_v51  ;;  %298 = vmatpush1.msra.mxu1 %v88_v52  ;;  %v2402_v18 = vld [vmem:[#allocation3 + $0x180] sm:$0xff]  ;;  %v2404_v19 = vld [vmem:[#allocation3 + $0x190] sm:$0xff]  ;;  %v2410_v21 = vld [vmem:[#allocation3 + $0x168] sm:$0xff] }
  0x42   :  { %186 = vmatprep.subr.mxu0 %v83_v53  ;;  %299 = vmatprep.subr.mxu1 %v85_v54  ;;  %v68_v20 = vld [vmem:[#allocation8 + $0x10] sm:$0xff]  ;;  %v2412_v22 = vld [vmem:[#allocation3 + $0x178] sm:$0xff]  ;;  %v2416_v23 = vld [vmem:[#allocation3 + $0x160] sm:$0xff] }
  0x43   :  { %187 = vmatpush1.msra.mxu0 %v82_v55  ;;  %300 = vmatpush1.msra.mxu1 %v84_v56  ;;  %v2418_v24 = vld [vmem:[#allocation3 + $0x170] sm:$0xff]  ;;  %v2420_v25 = vld [vmem:[#allocation3 + $0x148] sm:$0xff]  ;;  %v2422_v26 = vld [vmem:[#allocation3 + $0x158] sm:$0xff] }
  0x44   :  { %188 = vmatprep.subr.mxu0 %v79_v57  ;;  %301 = vmatprep.subr.mxu1 %v81_v58  ;;  %v2428_v27 = vld [vmem:[#allocation3 + $0x140] sm:$0xff]  ;;  %v2430_v28 = vld [vmem:[#allocation3 + $0x150] sm:$0xff]  ;;  %v69_v29 = vld [vmem:[#allocation8 + $0x18] sm:$0xff] }
  0x45   :  { %189 = vmatpush1.msra.mxu0 %v78_v59  ;;  %302 = vmatpush1.msra.mxu1 %v80_v60  ;;  %v2436_v30 = vld [vmem:[#allocation3 + $0x128] sm:$0xff]  ;;  %v2438_v31 = vld [vmem:[#allocation3 + $0x138] sm:$0xff]  ;;  %v2442_v32 = vld [vmem:[#allocation3 + $0x120] sm:$0xff] }
  0x46   :  { %190 = vmatprep.subr.mxu0 %v75_v61  ;;  %303 = vmatprep.subr.mxu1 %v77_v62  ;;  %v2444_v33 = vld [vmem:[#allocation3 + $0x130] sm:$0xff]  ;;  %v2446_v34 = vld [vmem:[#allocation3 + $0x108] sm:$0xff]  ;;  %v2448_v35 = vld [vmem:[#allocation3 + $0x118] sm:$0xff] }
  0x47   :  { %191 = vmatpush1.msra.mxu0 %v74_v63  ;;  %304 = vmatpush1.msra.mxu1 %v76_v1  ;;  %v2454_v36 = vld [vmem:[#allocation3 + $0x100] sm:$0xff]  ;;  %v2456_v37 = vld [vmem:[#allocation3 + $0x110] sm:$0xff]  ;;  %v2462_v39 = vld [vmem:[#allocation3 + $0xe8] sm:$0xff] }
  0x48   :  { %225 = vmatmul.mubr.f32.vlgmr.msra.gmra.mxu0 %v66_v2  ;;  %338 = vmatmul.mubr.f32.vlgmr.msra.gmra.mxu1 %v66_v2  ;;  %v70_v38 = vld [vmem:[#allocation8 + $0x20] sm:$0xff]  ;;  %v2464_v40 = vld [vmem:[#allocation3 + $0xf8] sm:$0xff]  ;;  %v2470_v42 = vld [vmem:[#allocation3 + $0xf0] sm:$0xff] }
  0x49   :  { %491 = vmatprep.subr.mxu0 %v2360_v3  ;;  %562 = vmatprep.subr.mxu1 %v2362_v4  ;;  %v2468_v41 = vld [vmem:[#allocation3 + $0xe0] sm:$0xff]  ;;  %v2472_v43 = vld [vmem:[#allocation3 + $0xc8] sm:$0xff]  ;;  %v2474_v44 = vld [vmem:[#allocation3 + $0xd8] sm:$0xff] }
  0x4a   :  { %492 = vmatpush1.msra.mxu0 %v2364_v5  ;;  %563 = vmatpush1.msra.mxu1 %v2366_v6  ;;  %v2480_v45 = vld [vmem:[#allocation3 + $0xc0] sm:$0xff]  ;;  %v2482_v46 = vld [vmem:[#allocation3 + $0xd0] sm:$0xff]  ;;  %v71_v47 = vld [vmem:[#allocation8 + $0x28] sm:$0xff] }
  0x4b   :  { %493 = vmatprep.subr.mxu0 %v2368_v7  ;;  %564 = vmatprep.subr.mxu1 %v2370_v8  ;;  %v2488_v48 = vld [vmem:[#allocation3 + $0xa8] sm:$0xff]  ;;  %v2490_v49 = vld [vmem:[#allocation3 + $0xb8] sm:$0xff]  ;;  %v2494_v50 = vld [vmem:[#allocation3 + $0xa0] sm:$0xff] }
  0x4c   :  { %230 = vmatprep.mubr.f32.mxu0 %v3318_v0  ;;  %343 = vmatprep.mubr.f32.mxu1 %v3318_v0  ;;  %v2496_v51 = vld [vmem:[#allocation3 + $0xb0] sm:$0xff]  ;;  %v2498_v52 = vld [vmem:[#allocation3 + $0x88] sm:$0xff]  ;;  %v2500_v53 = vld [vmem:[#allocation3 + $0x98] sm:$0xff] }
  0x4d   :  { %494 = vmatpush1.msra.mxu0 %v2376_v9  ;;  %565 = vmatpush1.msra.mxu1 %v2378_v10  ;;  %3408 = vst [vmem:[#allocation27_spill] sm:$0xff] %v2498_v52  ;;  %3409 = vst [vmem:[#allocation28_spill] sm:$0xff] %v2500_v53  ;;  %v2506_v54 = vld [vmem:[#allocation3 + $0x80] sm:$0xff]  ;;  %v2508_v55 = vld [vmem:[#allocation3 + $0x90] sm:$0xff] }
  0x4e   :  { %231 = vmatmul.mubr.f32.gmra.mxu0 %v67_v11  ;;  %344 = vmatmul.mubr.f32.gmra.mxu1 %v67_v11  ;;  %3410 = vst [vmem:[#allocation29_spill] sm:$0xff] %v2506_v54  ;;  %3411 = vst [vmem:[#allocation30_spill] sm:$0xff] %v2508_v55  ;;  %v72_v56 = vld [vmem:[#allocation8 + $0x30] sm:$0xff]  ;;  %v2514_v57 = vld [vmem:[#allocation3 + $0x68] sm:$0xff] }
  0x4f   :  { %495 = vmatprep.subr.mxu0 %v2384_v12  ;;  %566 = vmatprep.subr.mxu1 %v2386_v13  ;;  %3412 = vst [vmem:[#allocation31_spill] sm:$0xff] %v2514_v57  ;;  %v2516_v58 = vld [vmem:[#allocation3 + $0x78] sm:$0xff]  ;;  %v2520_v59 = vld [vmem:[#allocation3 + $0x60] sm:$0xff]  ;;  %v2522_v60 = vld [vmem:[#allocation3 + $0x70] sm:$0xff] }
  0x50   :  { %496 = vmatpush1.msra.mxu0 %v2390_v14  ;;  %567 = vmatpush1.msra.mxu1 %v2392_v15  ;;  %3413 = vst [vmem:[#allocation32_spill] sm:$0xff] %v2516_v58  ;;  %3414 = vst [vmem:[#allocation33_spill] sm:$0xff] %v2520_v59  ;;  %v2524_v61 = vld [vmem:[#allocation3 + $0x48] sm:$0xff]  ;;  %v2526_v62 = vld [vmem:[#allocation3 + $0x58] sm:$0xff] }
  0x51   :  { %497 = vmatprep.subr.mxu0 %v2394_v16  ;;  %568 = vmatprep.subr.mxu1 %v2396_v17  ;;  %3415 = vst [vmem:[#allocation34_spill] sm:$0xff] %v2522_v60  ;;  %3416 = vst [vmem:[#allocation35_spill] sm:$0xff] %v2524_v61  ;;  %v2532_v63 = vld [vmem:[#allocation3 + $0x40] sm:$0xff]  ;;  %v2534_v1 = vld [vmem:[#allocation3 + $0x50] sm:$0xff] }
  0x52   :  { %236 = vmatprep.mubr.f32.mxu0 %v3318_v0  ;;  %349 = vmatprep.mubr.f32.mxu1 %v3318_v0  ;;  %3417 = vst [vmem:[#allocation36_spill] sm:$0xff] %v2526_v62  ;;  %3418 = vst [vmem:[#allocation37_spill] sm:$0xff] %v2532_v63  ;;  %v73_v2 = vld [vmem:[#allocation8 + $0x38] sm:$0xff]  ;;  %v2540_v11 = vld [vmem:[#allocation3 + $0x28] sm:$0xff] }
  0x53   :  { %498 = vmatpush1.msra.mxu0 %v2402_v18  ;;  %569 = vmatpush1.msra.mxu1 %v2404_v19  ;;  %3419 = vst [vmem:[#allocation38_spill] sm:$0xff] %v2534_v1  ;;  %3420 = vst [vmem:[#allocation39_spill] sm:$0xff] %v2540_v11 }
  0x54   :  { %237 = vmatmul.mubr.f32.gmra.mxu0 %v68_v20  ;;  %350 = vmatmul.mubr.f32.gmra.mxu1 %v68_v20  ;;  %v2542_v20 = vld [vmem:[#allocation3 + $0x38] sm:$0xff] }
  0x55   :  { %499 = vmatprep.subr.mxu0 %v2410_v21  ;;  %570 = vmatprep.subr.mxu1 %v2412_v22  ;;  %3421 = vst [vmem:[#allocation40_spill] sm:$0xff] %v2542_v20 }
  0x56   :  { %500 = vmatpush1.msra.mxu0 %v2416_v23  ;;  %571 = vmatpush1.msra.mxu1 %v2418_v24 }
  0x57   :  { %501 = vmatprep.subr.mxu0 %v2420_v25  ;;  %572 = vmatprep.subr.mxu1 %v2422_v26 }
  0x58   :  { %242 = vmatprep.mubr.f32.mxu0 %v3318_v0  ;;  %355 = vmatprep.mubr.f32.mxu1 %v3318_v0 }
  0x59   :  { %502 = vmatpush1.msra.mxu0 %v2428_v27  ;;  %573 = vmatpush1.msra.mxu1 %v2430_v28 }
  0x5a   :  { %243 = vmatmul.mubr.f32.gmra.mxu0 %v69_v29  ;;  %356 = vmatmul.mubr.f32.gmra.mxu1 %v69_v29  ;;  %v2546_v29 = vld [vmem:[#allocation3 + $0x20] sm:$0xff] }
  0x5b   :  { %503 = vmatprep.subr.mxu0 %v2436_v30  ;;  %574 = vmatprep.subr.mxu1 %v2438_v31  ;;  %3422 = vst [vmem:[#allocation41_spill] sm:$0xff] %v2546_v29 }
  0x5c   :  { %504 = vmatpush1.msra.mxu0 %v2442_v32  ;;  %575 = vmatpush1.msra.mxu1 %v2444_v33 }
  0x5d   :  { %505 = vmatprep.subr.mxu0 %v2446_v34  ;;  %576 = vmatprep.subr.mxu1 %v2448_v35 }
  0x5e   :  { %248 = vmatprep.mubr.f32.mxu0 %v3318_v0  ;;  %361 = vmatprep.mubr.f32.mxu1 %v3318_v0 }
  0x5f   :  { %506 = vmatpush1.msra.mxu0 %v2454_v36  ;;  %577 = vmatpush1.msra.mxu1 %v2456_v37 }
  0x60   :  { %249 = vmatmul.mubr.f32.gmra.mxu0 %v70_v38  ;;  %362 = vmatmul.mubr.f32.gmra.mxu1 %v70_v38  ;;  %v2548_v38 = vld [vmem:[#allocation3 + $0x30] sm:$0xff] }
  0x61   :  { %507 = vmatprep.subr.mxu0 %v2462_v39  ;;  %578 = vmatprep.subr.mxu1 %v2464_v40  ;;  %3423 = vst [vmem:[#allocation42_spill] sm:$0xff] %v2548_v38 }
  0x62   :  { %508 = vmatpush1.msra.mxu0 %v2468_v41  ;;  %579 = vmatpush1.msra.mxu1 %v2470_v42 }
  0x63   :  { %509 = vmatprep.subr.mxu0 %v2472_v43  ;;  %580 = vmatprep.subr.mxu1 %v2474_v44 }
  0x64   :  { %254 = vmatprep.mubr.f32.mxu0 %v3318_v0  ;;  %367 = vmatprep.mubr.f32.mxu1 %v3318_v0 }
  0x65   :  { %510 = vmatpush1.msra.mxu0 %v2480_v45  ;;  %581 = vmatpush1.msra.mxu1 %v2482_v46 }
  0x66   :  { %255 = vmatmul.mubr.f32.gmra.mxu0 %v71_v47  ;;  %368 = vmatmul.mubr.f32.gmra.mxu1 %v71_v47  ;;  %v2550_v47 = vld [vmem:[#allocation3 + $0x8] sm:$0xff] }
  0x67   :  { %511 = vmatprep.subr.mxu0 %v2488_v48  ;;  %582 = vmatprep.subr.mxu1 %v2490_v49  ;;  %3424 = vst [vmem:[#allocation43_spill] sm:$0xff] %v2550_v47 }
  0x68   :  { %512 = vmatpush1.msra.mxu0 %v2494_v50  ;;  %583 = vmatpush1.msra.mxu1 %v2496_v51 }
  0x69   :  { %513 = vmatprep.subr.mxu0 %v2498_v52  ;;  %584 = vmatprep.subr.mxu1 %v2500_v53 }
  0x6a   :  { %260 = vmatprep.mubr.f32.mxu0 %v3318_v0  ;;  %373 = vmatprep.mubr.f32.mxu1 %v3318_v0 }
  0x6b   :  { %514 = vmatpush1.msra.mxu0 %v2506_v54  ;;  %585 = vmatpush1.msra.mxu1 %v2508_v55 }
  0x6c   :  { %261 = vmatmul.mubr.f32.gmra.mxu0 %v72_v56  ;;  %374 = vmatmul.mubr.f32.gmra.mxu1 %v72_v56  ;;  %v2552_v56 = vld [vmem:[#allocation3 + $0x18] sm:$0xff] }
  0x6d   :  { %515 = vmatprep.subr.mxu0 %v2514_v57  ;;  %586 = vmatprep.subr.mxu1 %v2516_v58  ;;  %3425 = vst [vmem:[#allocation44_spill] sm:$0xff] %v2552_v56 }
  0x6e   :  { %516 = vmatpush1.msra.mxu0 %v2520_v59  ;;  %587 = vmatpush1.msra.mxu1 %v2522_v60 }
  0x6f   :  { %517 = vmatprep.subr.mxu0 %v2524_v61  ;;  %588 = vmatprep.subr.mxu1 %v2526_v62 }
  0x70   :  { %266 = vmatprep.mubr.f32.mxu0 %v3318_v0  ;;  %379 = vmatprep.mubr.f32.mxu1 %v3318_v0  ;;  %v2556_v0 = vld [vmem:[#allocation3] sm:$0xff] }
  0x71   :  { %518 = vmatpush1.msra.mxu0 %v2532_v63  ;;  %589 = vmatpush1.msra.mxu1 %v2534_v1  ;;  %3426 = vst [vmem:[#allocation45_spill] sm:$0xff] %v2556_v0  ;;  %v2560_v1 = vld [vmem:[#allocation3 + $0x10] sm:$0xff] }
  0x72   :  { %267 = vmatmul.mubr.f32.gmra.mxu0 %v73_v2  ;;  %380 = vmatmul.mubr.f32.gmra.mxu1 %v73_v2  ;;  %3427 = vst [vmem:[#allocation46_spill] sm:$0xff] %v2560_v1  ;;  %v3428_v2 = vmov 0.0  }
  0x73   :  { %519 = vmatprep.subr.mxu0 %v2540_v11  ;;  %590 = vmatprep.subr.mxu1 %v2542_v20 }
  0x74   :  { %520 = vmatpush1.msra.mxu0 %v2546_v29  ;;  %591 = vmatpush1.msra.mxu1 %v2548_v38 }
  0x75   :  { %521 = vmatprep.subr.mxu0 %v2550_v47  ;;  %592 = vmatprep.subr.mxu1 %v2552_v56 }
  0x76   :  { %522 = vmatpush1.msra.mxu0 %v2556_v0  ;;  %555 = vmatprep.mubr.f32.mxu0 %v3428_v2 }
  0x77   :  { %593 = vmatpush1.msra.mxu1 %v2560_v1  ;;  %626 = vmatprep.mubr.f32.mxu1 %v3428_v2 }
  0x78   :  { %556 = vmatmul.mubr.f32.vlgmr.msra.gmra.mxu0 %v3428_v2  ;;  %627 = vmatmul.mubr.f32.vlgmr.msra.gmra.mxu1 %v3428_v2 }
  0x79   :  { %669 = vmatprep.subr.mxu0 %v2360_v3  ;;  %740 = vmatprep.subr.mxu1 %v2362_v4 }
  0x7a   :  { %670 = vmatpush1.msra.mxu0 %v2364_v5  ;;  %741 = vmatpush1.msra.mxu1 %v2366_v6 }
  0x7b   :  { %671 = vmatprep.subr.mxu0 %v2368_v7  ;;  %742 = vmatprep.subr.mxu1 %v2370_v8 }
  0x7c   :  { %672 = vmatpush1.msra.mxu0 %v2376_v9  ;;  %743 = vmatpush1.msra.mxu1 %v2378_v10 }
  0x7d   :  { %673 = vmatprep.subr.mxu0 %v2384_v12  ;;  %744 = vmatprep.subr.mxu1 %v2386_v13 }
  0x7e   :  { %674 = vmatpush1.msra.mxu0 %v2390_v14  ;;  %745 = vmatpush1.msra.mxu1 %v2392_v15 }
  0x7f   :  { %675 = vmatprep.subr.mxu0 %v2394_v16  ;;  %746 = vmatprep.subr.mxu1 %v2396_v17 }
  0x80   :  { %676 = vmatpush1.msra.mxu0 %v2402_v18  ;;  %747 = vmatpush1.msra.mxu1 %v2404_v19 }
  0x81   :  { %677 = vmatprep.subr.mxu0 %v2410_v21  ;;  %748 = vmatprep.subr.mxu1 %v2412_v22 }
  0x82   :  { %678 = vmatpush1.msra.mxu0 %v2416_v23  ;;  %749 = vmatpush1.msra.mxu1 %v2418_v24 }
  0x83   :  { %679 = vmatprep.subr.mxu0 %v2420_v25  ;;  %750 = vmatprep.subr.mxu1 %v2422_v26 }
  0x84   :  { %680 = vmatpush1.msra.mxu0 %v2428_v27  ;;  %751 = vmatpush1.msra.mxu1 %v2430_v28 }
  0x85   :  { %681 = vmatprep.subr.mxu0 %v2436_v30  ;;  %752 = vmatprep.subr.mxu1 %v2438_v31 }
  0x86   :  { %682 = vmatpush1.msra.mxu0 %v2442_v32  ;;  %753 = vmatpush1.msra.mxu1 %v2444_v33 }
  0x87   :  { %683 = vmatprep.subr.mxu0 %v2446_v34  ;;  %754 = vmatprep.subr.mxu1 %v2448_v35 }
  0x88   :  { %684 = vmatpush1.msra.mxu0 %v2454_v36  ;;  %755 = vmatpush1.msra.mxu1 %v2456_v37 }
  0x89   :  { %685 = vmatprep.subr.mxu0 %v2462_v39  ;;  %756 = vmatprep.subr.mxu1 %v2464_v40 }
  0x8a   :  { %686 = vmatpush1.msra.mxu0 %v2468_v41  ;;  %757 = vmatpush1.msra.mxu1 %v2470_v42 }
  0x8b   :  { %687 = vmatprep.subr.mxu0 %v2472_v43  ;;  %758 = vmatprep.subr.mxu1 %v2474_v44 }
  0x8c   :  { %688 = vmatpush1.msra.mxu0 %v2480_v45  ;;  %759 = vmatpush1.msra.mxu1 %v2482_v46 }
  0x8d   :  { %689 = vmatprep.subr.mxu0 %v2488_v48  ;;  %760 = vmatprep.subr.mxu1 %v2490_v49 }
  0x8e   :  { %690 = vmatpush1.msra.mxu0 %v2494_v50  ;;  %761 = vmatpush1.msra.mxu1 %v2496_v51 }
  0x8f   :  { %691 = vmatprep.subr.mxu0 %v2498_v52  ;;  %762 = vmatprep.subr.mxu1 %v2500_v53  ;;  %v3429_v52 = vld [vmem:[#allocation38_spill] sm:$0xff] }
  0x90   :  { %692 = vmatpush1.msra.mxu0 %v2506_v54  ;;  %763 = vmatpush1.msra.mxu1 %v2508_v55 }
  0x91   :  { %693 = vmatprep.subr.mxu0 %v2514_v57  ;;  %764 = vmatprep.subr.mxu1 %v2516_v58 }
  0x92   :  { %694 = vmatpush1.msra.mxu0 %v2520_v59  ;;  %765 = vmatpush1.msra.mxu1 %v2522_v60 }
  0x93   :  { %695 = vmatprep.subr.mxu0 %v2524_v61  ;;  %766 = vmatprep.subr.mxu1 %v2526_v62 }
  0x94   :  { %696 = vmatpush1.msra.mxu0 %v2532_v63  ;;  %767 = vmatpush1.msra.mxu1 %v3429_v52 }
  0x95   :  { %697 = vmatprep.subr.mxu0 %v2540_v11  ;;  %768 = vmatprep.subr.mxu1 %v2542_v20  ;;  %v140_v20 = vlaneseq }
  0x96   :  { %698 = vmatpush1.msra.mxu0 %v2546_v29  ;;  %769 = vmatpush1.msra.mxu1 %v2548_v38 }
  0x97   :  { %699 = vmatprep.subr.mxu0 %v2550_v47  ;;  %770 = vmatprep.subr.mxu1 %v2552_v56  ;;  %v141_v29 = vshrl.u32 %v140_v20, 7 }
  0x98   :  { %700 = vmatpush1.msra.mxu0 %v2556_v0  ;;  %733 = vmatprep.mubr.f32.mxu0 %v3428_v2  ;;  %v138_v0 = vld [vmem:[%s3315_s3] sm:$0xf]  ;;  %s2314_s3 = smov [#allocation12]  }
  0x99   :  { %771 = vmatpush1.msra.mxu1 %v2560_v1  ;;  %804 = vmatprep.mubr.f32.mxu1 %v3428_v2  ;;  %v142_v47 = vsub.s32 0, %v141_v29  ;;  %v150_v56 = vsub.s32 2, %v141_v29  ;;  %v146_v2 = vsub.s32 1, %v141_v29  ;;  %s1939_s9 = sshll.u32 %s2314_s3, 4  ;;  %s1940_s9 = int_to_ptr.vmem [resolvable:$true] %s1939_s9 }
  0x9a   :  { %848 = vmatprep.subr.mxu0 %v2360_v3  ;;  %919 = vmatprep.subr.mxu1 %v2362_v4  ;;  %v154_v3 = vsub.s32 3, %v141_v29  ;;  %s2258_s10 = scalar_lea.vmem %s1940_s9, 128  ;;  %p2263_p2 = scmp.lt.s32.totalorder %s1940_s9, %s1940_s9 }
  0x9b   :  { %v143_v63 = vrot.slane %v138_v0, %v142_v47  ;;  %v2649_v4 = vrot.slane %v138_v0, %v150_v56  ;;  %v147_v61 = vrot.slane %v138_v0, %v146_v2  ;;  %p2259_p1 = scmp.ne.s32.totalorder %s1940_s9, %s2258_s10  ;;  %p2264_p3 = scmp.lt.s32.totalorder %s2258_s10, %s2258_s10 }
  0x9c   :  { %v2651_v60 = vrot.slane %v138_v0, %v154_v3 }
  0x9d   :  { %p2265_p4 = por %p2264_p3, %p2263_p2 }
  0x9f   :  { %p2266_p5 = pnand %p2265_p4, %p2259_p1 }
 0x108   :  { %v2638_v11 = vpop.f32.mrf.mxu0  ;;  %v2640_v38 = vpop.f32.mrf.mxu1 }
 0x10a   :  { %v2645_v52 = vpop.f32.mrf.mxu0  ;;  %v2647_v1 = vpop.f32.mrf.mxu1 }
 0x10e   :  { %v232_v20 = vpop.f32.mrf.mxu0  ;;  %v345_v62 = vpop.f32.mrf.mxu1 }
 0x10f   :  { %v2653_v59 = vadd.f32 %v232_v20, %v143_v63  ;;  %v2656_v58 = vadd.f32 %v345_v62, %v2649_v4 }
 0x110   :  { %v234_v57 = vpop.f32.mrf.mxu0  ;;  %v347_v55 = vpop.f32.mrf.mxu1 }
 0x111   :  { %3430 = vst [vmem:[#allocation47_spill] sm:$0xff] %v2653_v59  ;;  %3431 = vst [vmem:[#allocation48_spill] sm:$0xff] %v2656_v58  ;;  %v2658_v54 = vadd.f32 %v234_v57, %v147_v61  ;;  %v2661_v53 = vadd.f32 %v347_v55, %v2651_v60 }
 0x113   :  { %3432 = vst [vmem:[#allocation49_spill] sm:$0xff] %v2658_v54  ;;  %3433 = vst [vmem:[#allocation50_spill] sm:$0xff] %v2661_v53 }
 0x114   :  { %v238_v29 = vpop.f32.mrf.mxu0  ;;  %v351_v47 = vpop.f32.mrf.mxu1 }
 0x115   :  { %v2663_v56 = vadd.f32 %v238_v29, %v143_v63  ;;  %v2666_v2 = vadd.f32 %v351_v47, %v2649_v4 }
 0x116   :  { %v240_v0 = vpop.f32.mrf.mxu0  ;;  %v353_v3 = vpop.f32.mrf.mxu1 }
 0x117   :  { %3434 = vst [vmem:[#allocation51_spill] sm:$0xff] %v2663_v56  ;;  %3435 = vst [vmem:[#allocation52_spill] sm:$0xff] %v2666_v2  ;;  %v2668_v20 = vadd.f32 %v240_v0, %v147_v61  ;;  %v2671_v62 = vadd.f32 %v353_v3, %v2651_v60 }
 0x119   :  { %3436 = vst [vmem:[#allocation53_spill] sm:$0xff] %v2668_v20  ;;  %3437 = vst [vmem:[#allocation54_spill] sm:$0xff] %v2671_v62 }
 0x11a   :  { %v244_v58 = vpop.f32.mrf.mxu0  ;;  %v357_v57 = vpop.f32.mrf.mxu1 }
 0x11b   :  { %v2673_v54 = vadd.f32 %v244_v58, %v143_v63  ;;  %v2676_v55 = vadd.f32 %v357_v57, %v2649_v4 }
 0x11c   :  { %v246_v53 = vpop.f32.mrf.mxu0  ;;  %v359_v29 = vpop.f32.mrf.mxu1 }
 0x11d   :  { %3438 = vst [vmem:[#allocation55_spill] sm:$0xff] %v2673_v54  ;;  %3439 = vst [vmem:[#allocation56_spill] sm:$0xff] %v2676_v55  ;;  %v2678_v56 = vadd.f32 %v246_v53, %v147_v61  ;;  %v2681_v47 = vadd.f32 %v359_v29, %v2651_v60 }
 0x11f   :  { %3440 = vst [vmem:[#allocation57_spill] sm:$0xff] %v2678_v56  ;;  %3441 = vst [vmem:[#allocation58_spill] sm:$0xff] %v2681_v47 }
 0x120   :  { %v250_v2 = vpop.f32.mrf.mxu0  ;;  %v363_v0 = vpop.f32.mrf.mxu1 }
 0x121   :  { %v2683_v20 = vadd.f32 %v250_v2, %v143_v63  ;;  %v2686_v3 = vadd.f32 %v363_v0, %v2649_v4 }
 0x122   :  { %v252_v62 = vpop.f32.mrf.mxu0  ;;  %v365_v58 = vpop.f32.mrf.mxu1 }
 0x123   :  { %3442 = vst [vmem:[#allocation59_spill] sm:$0xff] %v2683_v20  ;;  %3443 = vst [vmem:[#allocation60_spill] sm:$0xff] %v2686_v3  ;;  %v2688_v54 = vadd.f32 %v252_v62, %v147_v61  ;;  %v2691_v57 = vadd.f32 %v365_v58, %v2651_v60 }
 0x125   :  { %3444 = vst [vmem:[#allocation61_spill] sm:$0xff] %v2688_v54  ;;  %3445 = vst [vmem:[#allocation62_spill] sm:$0xff] %v2691_v57 }
 0x126   :  { %v256_v55 = vpop.f32.mrf.mxu0  ;;  %v369_v53 = vpop.f32.mrf.mxu1 }
 0x127   :  { %v2693_v56 = vadd.f32 %v256_v55, %v143_v63  ;;  %v2696_v29 = vadd.f32 %v369_v53, %v2649_v4 }
 0x128   :  { %v258_v47 = vpop.f32.mrf.mxu0  ;;  %v371_v2 = vpop.f32.mrf.mxu1 }
 0x129   :  { %3446 = vst [vmem:[#allocation63_spill] sm:$0xff] %v2693_v56  ;;  %3447 = vst [vmem:[#allocation64_spill] sm:$0xff] %v2696_v29  ;;  %v2698_v20 = vadd.f32 %v258_v47, %v147_v61  ;;  %v2701_v0 = vadd.f32 %v371_v2, %v2651_v60 }
 0x12b   :  { %3448 = vst [vmem:[#allocation65_spill] sm:$0xff] %v2698_v20  ;;  %3449 = vst [vmem:[#allocation66_spill] sm:$0xff] %v2701_v0 }
 0x12c   :  { %v262_v3 = vpop.f32.mrf.mxu0  ;;  %v375_v62 = vpop.f32.mrf.mxu1 }
 0x12d   :  { %v2703_v54 = vadd.f32 %v262_v3, %v143_v63  ;;  %v2706_v58 = vadd.f32 %v375_v62, %v2649_v4 }
 0x12e   :  { %v264_v57 = vpop.f32.mrf.mxu0  ;;  %v377_v55 = vpop.f32.mrf.mxu1 }
 0x12f   :  { %3450 = vst [vmem:[#allocation67_spill] sm:$0xff] %v2703_v54  ;;  %3451 = vst [vmem:[#allocation68_spill] sm:$0xff] %v2706_v58  ;;  %v2708_v56 = vadd.f32 %v264_v57, %v147_v61  ;;  %v2711_v53 = vadd.f32 %v377_v55, %v2651_v60  ;;  %v227_v57 = vadd.f32 %v2638_v11, %v143_v63 }
 0x130   :  { %v229_v55 = vadd.f32 %v2645_v52, %v147_v61 }
 0x131   :  { %3452 = vst [vmem:[#allocation69_spill] sm:$0xff] %v2708_v56  ;;  %3453 = vst [vmem:[#allocation70_spill] sm:$0xff] %v2711_v53 }
 0x132   :  { %v268_v29 = vpop.f32.mrf.mxu0  ;;  %v381_v47 = vpop.f32.mrf.mxu1 }
 0x133   :  { %v2713_v20 = vadd.f32 %v268_v29, %v143_v63  ;;  %v2716_v2 = vadd.f32 %v381_v47, %v2649_v4 }
 0x134   :  { %v270_v0 = vpop.f32.mrf.mxu0  ;;  %v383_v3 = vpop.f32.mrf.mxu1 }
 0x135   :  { %3454 = vst [vmem:[#allocation71_spill] sm:$0xff] %v2713_v20  ;;  %3455 = vst [vmem:[#allocation72_spill] sm:$0xff] %v2716_v2  ;;  %v2718_v54 = vadd.f32 %v270_v0, %v147_v61  ;;  %v2721_v62 = vadd.f32 %v383_v3, %v2651_v60  ;;  %v340_v0 = vadd.f32 %v2640_v38, %v2649_v4 }
 0x136   :  { %v342_v3 = vadd.f32 %v2647_v1, %v2651_v60 }
 0x137   :  { %3456 = vst [vmem:[#allocation73_spill] sm:$0xff] %v2718_v54  ;;  %3457 = vst [vmem:[#allocation74_spill] sm:$0xff] %v2721_v62 }
 0x138   :  { %v557_v58 = vpop.f32.mrf.mxu0  ;;  %v628_v47 = vpop.f32.mrf.mxu1 }
 0x139   :  { %v633_v53 = vadd.f32 %v557_v58, %v227_v57  ;;  %v635_v2 = vadd.f32 %v628_v47, %v340_v0  ;;  %v3461_v47 = vld [vmem:[#allocation30_spill] sm:$0xff]  ;;  %v3462_v0 = vld [vmem:[#allocation31_spill] sm:$0xff] }
 0x13a   :  { %v559_v56 = vpop.f32.mrf.mxu0  ;;  %v630_v54 = vpop.f32.mrf.mxu1 }
 0x13b   :  { %v1972_v59 = vmul.f32 -1.442695, %v633_v53  ;;  %v634_v29 = vadd.f32 %v559_v56, %v229_v55  ;;  %v1974_v63 = vmul.f32 -1.442695, %v635_v2  ;;  %v636_v62 = vadd.f32 %v630_v54, %v342_v3  ;;  %v3458_v2 = vld [vmem:[#allocation27_spill] sm:$0xff]  ;;  %v3463_v3 = vld [vmem:[#allocation32_spill] sm:$0xff] }
 0x13d   :  { %2006 = vpow2.f32 %v1972_v59  ;;  %v1973_v20 = vmul.f32 -1.442695, %v634_v29  ;;  %v3460_v29 = vld [vmem:[#allocation29_spill] sm:$0xff] }
 0x13f   :  { %2008 = vpow2.f32 %v1973_v20 }
 0x140   :  { %2010 = vpow2.f32 %v1974_v63  ;;  %v3464_v63 = vld [vmem:[#allocation33_spill] sm:$0xff] }
 0x14a   :  { %v2007_v11 = vpop.eup %2006 }
 0x14b   :  { %v646_v52 = vadd.f32 1.0, %v2007_v11  ;;  %v3465_v11 = vld [vmem:[#allocation34_spill] sm:$0xff] }
 0x14c   :  { %v2009_v61 = vpop.eup %2008 }
 0x14d   :  { %2012 = vrcp.f32 %v646_v52  ;;  %v647_v56 = vadd.f32 1.0, %v2009_v61  ;;  %v2011_v59 = vpop.eup %2010  ;;  %v3466_v52 = vld [vmem:[#allocation35_spill] sm:$0xff]  ;;  %v3467_v61 = vld [vmem:[#allocation36_spill] sm:$0xff] }
 0x14e   :  { %2014 = vtanh.f32 %v636_v62  ;;  %v648_v4 = vadd.f32 1.0, %v2011_v59  ;;  %v3459_v62 = vld [vmem:[#allocation28_spill] sm:$0xff]  ;;  %v3469_v59 = vld [vmem:[#allocation38_spill] sm:$0xff] }
 0x14f   :  { %2016 = vrcp.f32 %v647_v56  ;;  %v3468_v56 = vld [vmem:[#allocation37_spill] sm:$0xff] }
 0x150   :  { %2018 = vrcp.f32 %v648_v4  ;;  %v3473_v4 = vld [vmem:[#allocation42_spill] sm:$0xff] }
 0x15a   :  { %v2013_v20 = vpop.eup %2012 }
 0x15b   :  { %v2015_v58 = vpop.eup %2014 }
 0x15c   :  { %v2017_v53 = vpop.eup %2016  ;;  %v657_v57 = vmul.f32 %v2015_v58, %v2013_v20  ;;  %v3470_v20 = vld [vmem:[#allocation39_spill] sm:$0xff]  ;;  %v3471_v58 = vld [vmem:[#allocation40_spill] sm:$0xff] }
 0x15d   :  { %v656_v38 = vmul.f32 0.0, %v2017_v53  ;;  %v2019_v54 = vpop.eup %2018  ;;  %v3472_v53 = vld [vmem:[#allocation41_spill] sm:$0xff] }
 0x15f   :  { %v2729_v55 = vadd.f32 %v657_v57, %v656_v38  ;;  %v3474_v38 = vld [vmem:[#allocation43_spill] sm:$0xff]  ;;  %v3475_v57 = vld [vmem:[#allocation44_spill] sm:$0xff] }
 0x161   :  { %2020 = vtanh.f32 %v2729_v55 }
 0x16e   :  { %v2021_v60 = vpop.eup %2020 }
 0x16f   :  { %v660_v1 = vmul.f32 %v2021_v60, %v2019_v54  ;;  %v3476_v54 = vld [vmem:[#allocation45_spill] sm:$0xff]  ;;  %v3477_v60 = vmov 0.0  }
 0x171   :  { %661 = vst [vmem:[#allocation11] sm:$0xff] %v660_v1  ;;  %734 = vmatmul.mubr.f32.vlgmr.msra.gmra.mxu0 %v660_v1  ;;  %805 = vmatmul.mubr.f32.vlgmr.msra.gmra.mxu1 %v660_v1  ;;  %v3478_v1 = vld [vmem:[#allocation46_spill] sm:$0xff] }
 0x172   :  { %849 = vmatpush1.msra.mxu0 %v2364_v5  ;;  %920 = vmatpush1.msra.mxu1 %v2366_v6 }
 0x173   :  { %850 = vmatprep.subr.mxu0 %v2368_v7  ;;  %921 = vmatprep.subr.mxu1 %v2370_v8 }
 0x174   :  { %851 = vmatpush1.msra.mxu0 %v2376_v9  ;;  %922 = vmatpush1.msra.mxu1 %v2378_v10 }
 0x175   :  { %852 = vmatprep.subr.mxu0 %v2384_v12  ;;  %923 = vmatprep.subr.mxu1 %v2386_v13 }
 0x176   :  { %853 = vmatpush1.msra.mxu0 %v2390_v14  ;;  %924 = vmatpush1.msra.mxu1 %v2392_v15 }
 0x177   :  { %854 = vmatprep.subr.mxu0 %v2394_v16  ;;  %925 = vmatprep.subr.mxu1 %v2396_v17 }
 0x178   :  { %855 = vmatpush1.msra.mxu0 %v2402_v18  ;;  %926 = vmatpush1.msra.mxu1 %v2404_v19 }
 0x179   :  { %856 = vmatprep.subr.mxu0 %v2410_v21  ;;  %927 = vmatprep.subr.mxu1 %v2412_v22 }
 0x17a   :  { %857 = vmatpush1.msra.mxu0 %v2416_v23  ;;  %928 = vmatpush1.msra.mxu1 %v2418_v24 }
 0x17b   :  { %858 = vmatprep.subr.mxu0 %v2420_v25  ;;  %929 = vmatprep.subr.mxu1 %v2422_v26 }
 0x17c   :  { %859 = vmatpush1.msra.mxu0 %v2428_v27  ;;  %930 = vmatpush1.msra.mxu1 %v2430_v28 }
 0x17d   :  { %860 = vmatprep.subr.mxu0 %v2436_v30  ;;  %931 = vmatprep.subr.mxu1 %v2438_v31 }
 0x17e   :  { %861 = vmatpush1.msra.mxu0 %v2442_v32  ;;  %932 = vmatpush1.msra.mxu1 %v2444_v33 }
 0x17f   :  { %862 = vmatprep.subr.mxu0 %v2446_v34  ;;  %933 = vmatprep.subr.mxu1 %v2448_v35 }
 0x180   :  { %863 = vmatpush1.msra.mxu0 %v2454_v36  ;;  %934 = vmatpush1.msra.mxu1 %v2456_v37 }
 0x181   :  { %864 = vmatprep.subr.mxu0 %v2462_v39  ;;  %935 = vmatprep.subr.mxu1 %v2464_v40 }
 0x182   :  { %865 = vmatpush1.msra.mxu0 %v2468_v41  ;;  %936 = vmatpush1.msra.mxu1 %v2470_v42 }
 0x183   :  { %866 = vmatprep.subr.mxu0 %v2472_v43  ;;  %937 = vmatprep.subr.mxu1 %v2474_v44 }
 0x184   :  { %867 = vmatpush1.msra.mxu0 %v2480_v45  ;;  %938 = vmatpush1.msra.mxu1 %v2482_v46 }
 0x185   :  { %868 = vmatprep.subr.mxu0 %v2488_v48  ;;  %939 = vmatprep.subr.mxu1 %v2490_v49 }
 0x186   :  { %869 = vmatpush1.msra.mxu0 %v2494_v50  ;;  %940 = vmatpush1.msra.mxu1 %v2496_v51 }
 0x187   :  { %870 = vmatprep.subr.mxu0 %v3458_v2  ;;  %941 = vmatprep.subr.mxu1 %v3459_v62 }
 0x188   :  { %871 = vmatpush1.msra.mxu0 %v3460_v29  ;;  %942 = vmatpush1.msra.mxu1 %v3461_v47 }
 0x189   :  { %872 = vmatprep.subr.mxu0 %v3462_v0  ;;  %943 = vmatprep.subr.mxu1 %v3463_v3 }
 0x18a   :  { %873 = vmatpush1.msra.mxu0 %v3464_v63  ;;  %944 = vmatpush1.msra.mxu1 %v3465_v11  ;;  %v3483_v11 = vld [vmem:[#allocation48_spill] sm:$0xff] }
 0x18b   :  { %874 = vmatprep.subr.mxu0 %v3466_v52  ;;  %945 = vmatprep.subr.mxu1 %v3467_v61 }
 0x18c   :  { %875 = vmatpush1.msra.mxu0 %v3468_v56  ;;  %946 = vmatpush1.msra.mxu1 %v3469_v59  ;;  %v3479_v59 = vld [vmem:[#allocation25_spill] sm:$0xff] }
 0x18d   :  { %876 = vmatprep.subr.mxu0 %v3470_v20  ;;  %947 = vmatprep.subr.mxu1 %v3471_v58  ;;  %v3480_v20 = vld [vmem:[#allocation26_spill] sm:$0xff] }
 0x18e   :  { %877 = vmatpush1.msra.mxu0 %v3472_v53  ;;  %948 = vmatpush1.msra.mxu1 %v3473_v4  ;;  %v3481_v53 = vld [vmem:[#allocation47_spill] sm:$0xff] }
 0x18f   :  { %878 = vmatprep.subr.mxu0 %v3474_v38  ;;  %949 = vmatprep.subr.mxu1 %v3475_v57  ;;  %v3482_v38 = vld [vmem:[#allocation49_spill] sm:$0xff] }
 0x190   :  { %879 = vmatpush1.msra.mxu0 %v3476_v54  ;;  %912 = vmatprep.mubr.f32.mxu0 %v3477_v60 }
 0x191   :  { %950 = vmatpush1.msra.mxu1 %v3478_v1  ;;  %983 = vmatprep.mubr.f32.mxu1 %v3477_v60  ;;  %v3484_v60 = vld [vmem:[#allocation50_spill] sm:$0xff] }
 0x192   :  { %1027 = vmatprep.subr.mxu0 %v3479_v59  ;;  %1098 = vmatprep.subr.mxu1 %v3480_v20 }
 0x231   :  { %v735_v58 = vpop.f32.mrf.mxu0  ;;  %v806_v54 = vpop.f32.mrf.mxu1 }
 0x232   :  { %v811_v56 = vadd.f32 %v735_v58, %v3481_v53  ;;  %v813_v63 = vadd.f32 %v806_v54, %v3483_v11 }
 0x233   :  { %v737_v4 = vpop.f32.mrf.mxu0  ;;  %v808_v1 = vpop.f32.mrf.mxu1 }
 0x234   :  { %v1975_v61 = vmul.f32 -1.442695, %v811_v56  ;;  %v812_v52 = vadd.f32 %v737_v4, %v3482_v38  ;;  %v1977_v3 = vmul.f32 -1.442695, %v813_v63  ;;  %v814_v0 = vadd.f32 %v808_v1, %v3484_v60 }
 0x236   :  { %2022 = vpow2.f32 %v1975_v61  ;;  %v1976_v57 = vmul.f32 -1.442695, %v812_v52 }
 0x238   :  { %2024 = vpow2.f32 %v1976_v57 }
 0x239   :  { %2026 = vpow2.f32 %v1977_v3 }
 0x23a   :  { %2028 = vtanh.f32 %v814_v0 }
 0x243   :  { %v2023_v59 = vpop.eup %2022 }
 0x244   :  { %v824_v47 = vadd.f32 1.0, %v2023_v59  ;;  %v3508_v59 = vld [vmem:[#allocation54_spill] sm:$0xff] }
 0x245   :  { %v2025_v20 = vpop.eup %2024 }
 0x246   :  { %2030 = vrcp.f32 %v824_v47  ;;  %v825_v58 = vadd.f32 1.0, %v2025_v20  ;;  %v2027_v56 = vpop.eup %2026  ;;  %v3507_v47 = vld [vmem:[#allocation52_spill] sm:$0xff] }
 0x247   :  { %v2029_v53 = vpop.eup %2028  ;;  %v826_v38 = vadd.f32 1.0, %v2027_v56 }
 0x248   :  { %2032 = vrcp.f32 %v825_v58 }
 0x249   :  { %2034 = vrcp.f32 %v826_v38 }
 0x253   :  { %v2031_v61 = vpop.eup %2030 }
 0x254   :  { %v835_v52 = vmul.f32 %v2031_v61, %v2029_v53 }
 0x255   :  { %v2033_v4 = vpop.eup %2032 }
 0x256   :  { %v834_v11 = vmul.f32 %v2033_v4, %v2729_v55  ;;  %v2035_v63 = vpop.eup %2034 }
 0x258   :  { %v2803_v57 = vadd.f32 %v835_v52, %v834_v11 }
 0x25a   :  { %2036 = vtanh.f32 %v2803_v57 }
 0x267   :  { %v2037_v3 = vpop.eup %2036 }
 0x268   :  { %v838_v54 = vmul.f32 %v2037_v3, %v2035_v63 }
 0x26a   :  { %840 = vst [vmem:[#allocation11 + $0x8] sm:$0xff] %v838_v54  ;;  %913 = vmatmul.mubr.f32.vlgmr.msra.gmra.mxu0 %v838_v54  ;;  %984 = vmatmul.mubr.f32.vlgmr.msra.gmra.mxu1 %v838_v54 }
 0x26b   :  { %1028 = vmatpush1.msra.mxu0 %v2364_v5  ;;  %1099 = vmatpush1.msra.mxu1 %v2366_v6  ;;  %v3485_v5 = vld [vmem:[#allocation30_spill] sm:$0xff]  ;;  %v3486_v6 = vld [vmem:[#allocation31_spill] sm:$0xff] }
 0x26c   :  { %1029 = vmatprep.subr.mxu0 %v2368_v7  ;;  %1100 = vmatprep.subr.mxu1 %v2370_v8  ;;  %v3487_v7 = vld [vmem:[#allocation32_spill] sm:$0xff]  ;;  %v3488_v8 = vld [vmem:[#allocation33_spill] sm:$0xff] }
 0x26d   :  { %1030 = vmatpush1.msra.mxu0 %v2376_v9  ;;  %1101 = vmatpush1.msra.mxu1 %v2378_v10  ;;  %v3489_v9 = vld [vmem:[#allocation34_spill] sm:$0xff]  ;;  %v3490_v10 = vld [vmem:[#allocation35_spill] sm:$0xff] }
 0x26e   :  { %1031 = vmatprep.subr.mxu0 %v2384_v12  ;;  %1102 = vmatprep.subr.mxu1 %v2386_v13  ;;  %v3491_v12 = vld [vmem:[#allocation36_spill] sm:$0xff]  ;;  %v3492_v13 = vld [vmem:[#allocation37_spill] sm:$0xff] }
 0x26f   :  { %1032 = vmatpush1.msra.mxu0 %v2390_v14  ;;  %1103 = vmatpush1.msra.mxu1 %v2392_v15  ;;  %v3493_v14 = vld [vmem:[#allocation38_spill] sm:$0xff]  ;;  %v3494_v15 = vld [vmem:[#allocation39_spill] sm:$0xff] }
 0x270   :  { %1033 = vmatprep.subr.mxu0 %v2394_v16  ;;  %1104 = vmatprep.subr.mxu1 %v2396_v17  ;;  %v3495_v16 = vld [vmem:[#allocation40_spill] sm:$0xff]  ;;  %v3496_v17 = vld [vmem:[#allocation41_spill] sm:$0xff] }
 0x271   :  { %1034 = vmatpush1.msra.mxu0 %v2402_v18  ;;  %1105 = vmatpush1.msra.mxu1 %v2404_v19  ;;  %v3497_v18 = vld [vmem:[#allocation42_spill] sm:$0xff]  ;;  %v3498_v19 = vld [vmem:[#allocation43_spill] sm:$0xff] }
 0x272   :  { %1035 = vmatprep.subr.mxu0 %v2410_v21  ;;  %1106 = vmatprep.subr.mxu1 %v2412_v22  ;;  %v3499_v21 = vld [vmem:[#allocation44_spill] sm:$0xff]  ;;  %v3500_v22 = vld [vmem:[#allocation45_spill] sm:$0xff] }
 0x273   :  { %1036 = vmatpush1.msra.mxu0 %v2416_v23  ;;  %1107 = vmatpush1.msra.mxu1 %v2418_v24  ;;  %v3501_v23 = vmov 0.0   ;;  %v3502_v24 = vld [vmem:[#allocation46_spill] sm:$0xff] }
 0x274   :  { %1037 = vmatprep.subr.mxu0 %v2420_v25  ;;  %1108 = vmatprep.subr.mxu1 %v2422_v26  ;;  %v2870_v25 = vld [vmem:[#allocation3 + $0x1e8] sm:$0xff]  ;;  %v2873_v26 = vld [vmem:[#allocation3 + $0x1f8] sm:$0xff] }
 0x275   :  { %1038 = vmatpush1.msra.mxu0 %v2428_v27  ;;  %1109 = vmatpush1.msra.mxu1 %v2430_v28  ;;  %3503 = vst [vmem:[#allocation27_spill] sm:$0xff] %v2870_v25  ;;  %3504 = vst [vmem:[#allocation28_spill] sm:$0xff] %v2873_v26  ;;  %v3505_v28 = vld [vmem:[#allocation51_spill] sm:$0xff] }
 0x276   :  { %1039 = vmatprep.subr.mxu0 %v2436_v30  ;;  %1110 = vmatprep.subr.mxu1 %v2438_v31 }
 0x277   :  { %1040 = vmatpush1.msra.mxu0 %v2442_v32  ;;  %1111 = vmatpush1.msra.mxu1 %v2444_v33  ;;  %v3506_v33 = vld [vmem:[#allocation53_spill] sm:$0xff] }
 0x278   :  { %1041 = vmatprep.subr.mxu0 %v2446_v34  ;;  %1112 = vmatprep.subr.mxu1 %v2448_v35 }
 0x279   :  { %1042 = vmatpush1.msra.mxu0 %v2454_v36  ;;  %1113 = vmatpush1.msra.mxu1 %v2456_v37 }
 0x27a   :  { %1043 = vmatprep.subr.mxu0 %v2462_v39  ;;  %1114 = vmatprep.subr.mxu1 %v2464_v40 }
 0x27b   :  { %1044 = vmatpush1.msra.mxu0 %v2468_v41  ;;  %1115 = vmatpush1.msra.mxu1 %v2470_v42 }
 0x27c   :  { %1045 = vmatprep.subr.mxu0 %v2472_v43  ;;  %1116 = vmatprep.subr.mxu1 %v2474_v44 }
 0x27d   :  { %1046 = vmatpush1.msra.mxu0 %v2480_v45  ;;  %1117 = vmatpush1.msra.mxu1 %v2482_v46 }
 0x27e   :  { %1047 = vmatprep.subr.mxu0 %v2488_v48  ;;  %1118 = vmatprep.subr.mxu1 %v2490_v49 }
 0x27f   :  { %1048 = vmatpush1.msra.mxu0 %v2494_v50  ;;  %1119 = vmatpush1.msra.mxu1 %v2496_v51 }
 0x280   :  { %1049 = vmatprep.subr.mxu0 %v3458_v2  ;;  %1120 = vmatprep.subr.mxu1 %v3459_v62 }
 0x281   :  { %1050 = vmatpush1.msra.mxu0 %v3460_v29  ;;  %1121 = vmatpush1.msra.mxu1 %v3485_v5 }
 0x282   :  { %1051 = vmatprep.subr.mxu0 %v3486_v6  ;;  %1122 = vmatprep.subr.mxu1 %v3487_v7 }
 0x283   :  { %1052 = vmatpush1.msra.mxu0 %v3488_v8  ;;  %1123 = vmatpush1.msra.mxu1 %v3489_v9 }
 0x284   :  { %1053 = vmatprep.subr.mxu0 %v3490_v10  ;;  %1124 = vmatprep.subr.mxu1 %v3491_v12 }
 0x285   :  { %1054 = vmatpush1.msra.mxu0 %v3492_v13  ;;  %1125 = vmatpush1.msra.mxu1 %v3493_v14 }
 0x286   :  { %1055 = vmatprep.subr.mxu0 %v3494_v15  ;;  %1126 = vmatprep.subr.mxu1 %v3495_v16 }
 0x287   :  { %1056 = vmatpush1.msra.mxu0 %v3496_v17  ;;  %1127 = vmatpush1.msra.mxu1 %v3497_v18 }
 0x288   :  { %1057 = vmatprep.subr.mxu0 %v3498_v19  ;;  %1128 = vmatprep.subr.mxu1 %v3499_v21 }
 0x289   :  { %1058 = vmatpush1.msra.mxu0 %v3500_v22  ;;  %1091 = vmatprep.mubr.f32.mxu0 %v3501_v23 }
 0x28a   :  { %1129 = vmatpush1.msra.mxu1 %v3502_v24  ;;  %1162 = vmatprep.mubr.f32.mxu1 %v3501_v23 }
 0x28b   :  { %1206 = vmatprep.subr.mxu0 %v2870_v25  ;;  %1277 = vmatprep.subr.mxu1 %v2873_v26 }
 0x32a   :  { %v914_v27 = vpop.f32.mrf.mxu0  ;;  %v985_v55 = vpop.f32.mrf.mxu1 }
 0x32b   :  { %v990_v30 = vadd.f32 %v914_v27, %v3505_v28  ;;  %v992_v0 = vadd.f32 %v985_v55, %v3507_v47  ;;  %v2899_v55 = vld [vmem:[#allocation3 + $0x1d0] sm:$0xff]  ;;  %v2902_v47 = vld [vmem:[#allocation3 + $0x1a8] sm:$0xff] }
 0x32c   :  { %v916_v31 = vpop.f32.mrf.mxu0  ;;  %v987_v60 = vpop.f32.mrf.mxu1 }
 0x32d   :  { %v1978_v32 = vmul.f32 -1.442695, %v990_v30  ;;  %v991_v34 = vadd.f32 %v916_v31, %v3506_v33  ;;  %v1980_v1 = vmul.f32 -1.442695, %v992_v0  ;;  %v993_v20 = vadd.f32 %v987_v60, %v3508_v59  ;;  %v2887_v33 = vld [vmem:[#allocation3 + $0x1f0] sm:$0xff]  ;;  %v2905_v0 = vld [vmem:[#allocation3 + $0x1b8] sm:$0xff] }
 0x32e   :  { %v2908_v60 = vld [vmem:[#allocation3 + $0x1a0] sm:$0xff]  ;;  %v2914_v59 = vld [vmem:[#allocation3 + $0x188] sm:$0xff] }
 0x32f   :  { %2038 = vpow2.f32 %v1978_v32  ;;  %v1979_v35 = vmul.f32 -1.442695, %v991_v34  ;;  %v2884_v32 = vld [vmem:[#allocation3 + $0x1e0] sm:$0xff]  ;;  %v2893_v34 = vld [vmem:[#allocation3 + $0x1d8] sm:$0xff] }
 0x331   :  { %2040 = vpow2.f32 %v1979_v35  ;;  %v2896_v35 = vld [vmem:[#allocation3 + $0x1c0] sm:$0xff] }
 0x332   :  { %2042 = vpow2.f32 %v1980_v1  ;;  %v2911_v1 = vld [vmem:[#allocation3 + $0x1b0] sm:$0xff] }
 0x333   :  { %2044 = vtanh.f32 %v993_v20  ;;  %v2917_v20 = vld [vmem:[#allocation3 + $0x198] sm:$0xff] }
 0x33c   :  { %v2039_v58 = vpop.eup %2038 }
 0x33d   :  { %v1003_v56 = vadd.f32 1.0, %v2039_v58  ;;  %v2920_v58 = vld [vmem:[#allocation3 + $0x180] sm:$0xff] }
 0x33e   :  { %v2041_v53 = vpop.eup %2040 }
 0x33f   :  { %2046 = vrcp.f32 %v1003_v56  ;;  %v1004_v61 = vadd.f32 1.0, %v2041_v53  ;;  %v2043_v52 = vpop.eup %2042  ;;  %v2923_v56 = vld [vmem:[#allocation3 + $0x190] sm:$0xff]  ;;  %v2926_v53 = vld [vmem:[#allocation3 + $0x168] sm:$0xff] }
 0x340   :  { %v2045_v4 = vpop.eup %2044  ;;  %v1005_v3 = vadd.f32 1.0, %v2043_v52  ;;  %v2932_v52 = vld [vmem:[#allocation3 + $0x160] sm:$0xff] }
 0x341   :  { %2048 = vrcp.f32 %v1004_v61  ;;  %v2929_v61 = vld [vmem:[#allocation3 + $0x178] sm:$0xff] }
 0x342   :  { %2050 = vrcp.f32 %v1005_v3  ;;  %v2947_v3 = vld [vmem:[#allocation3 + $0x150] sm:$0xff] }
 0x343   :  { %3510 = vst [vmem:[#allocation25_spill] sm:$0xff] %v2947_v3 }
 0x34c   :  { %v2047_v38 = vpop.eup %2046 }
 0x34d   :  { %v1014_v11 = vmul.f32 %v2047_v38, %v2045_v4  ;;  %v2935_v4 = vld [vmem:[#allocation3 + $0x170] sm:$0xff]  ;;  %v2938_v38 = vld [vmem:[#allocation3 + $0x148] sm:$0xff] }
 0x34e   :  { %v2049_v63 = vpop.eup %2048 }
 0x34f   :  { %v1013_v54 = vmul.f32 %v2049_v63, %v2803_v57  ;;  %v2051_v28 = vpop.eup %2050  ;;  %v2890_v57 = vld [vmem:[#allocation3 + $0x1c8] sm:$0xff]  ;;  %v2944_v63 = vld [vmem:[#allocation3 + $0x140] sm:$0xff] }
 0x350   :  { %3509 = vst [vmem:[#allocation29_spill] sm:$0xff] %v2944_v63 }
 0x351   :  { %v2881_v27 = vadd.f32 %v1014_v11, %v1013_v54  ;;  %v2941_v11 = vld [vmem:[#allocation3 + $0x158] sm:$0xff]  ;;  %v2950_v54 = vld [vmem:[#allocation3 + $0x128] sm:$0xff] }
 0x353   :  { %2052 = vtanh.f32 %v2881_v27 }
 0x360   :  { %v2053_v30 = vpop.eup %2052 }
 0x361   :  { %v1017_v31 = vmul.f32 %v2053_v30, %v2051_v28  ;;  %v2953_v28 = vld [vmem:[#allocation3 + $0x138] sm:$0xff]  ;;  %v2956_v30 = vld [vmem:[#allocation3 + $0x120] sm:$0xff] }
 0x363   :  { %1019 = vst [vmem:[#allocation11 + $0x10] sm:$0xff] %v1017_v31  ;;  %1092 = vmatmul.mubr.f32.vlgmr.msra.gmra.mxu0 %v1017_v31  ;;  %1163 = vmatmul.mubr.f32.vlgmr.msra.gmra.mxu1 %v1017_v31  ;;  %v2959_v31 = vld [vmem:[#allocation3 + $0x130] sm:$0xff] }
 0x364   :  { %1207 = vmatpush1.msra.mxu0 %v2884_v32  ;;  %1278 = vmatpush1.msra.mxu1 %v2887_v33 }
 0x365   :  { %1208 = vmatprep.subr.mxu0 %v2890_v57  ;;  %1279 = vmatprep.subr.mxu1 %v2893_v34 }
 0x366   :  { %1209 = vmatpush1.msra.mxu0 %v2896_v35  ;;  %1280 = vmatpush1.msra.mxu1 %v2899_v55 }
 0x367   :  { %1210 = vmatprep.subr.mxu0 %v2902_v47  ;;  %1281 = vmatprep.subr.mxu1 %v2905_v0 }
 0x368   :  { %1211 = vmatpush1.msra.mxu0 %v2908_v60  ;;  %1282 = vmatpush1.msra.mxu1 %v2911_v1 }
 0x369   :  { %1212 = vmatprep.subr.mxu0 %v2914_v59  ;;  %1283 = vmatprep.subr.mxu1 %v2917_v20 }
 0x36a   :  { %1213 = vmatpush1.msra.mxu0 %v2920_v58  ;;  %1284 = vmatpush1.msra.mxu1 %v2923_v56 }
 0x36b   :  { %1214 = vmatprep.subr.mxu0 %v2926_v53  ;;  %1285 = vmatprep.subr.mxu1 %v2929_v61 }
 0x36c   :  { %1215 = vmatpush1.msra.mxu0 %v2932_v52  ;;  %1286 = vmatpush1.msra.mxu1 %v2935_v4 }
 0x36d   :  { %1216 = vmatprep.subr.mxu0 %v2938_v38  ;;  %1287 = vmatprep.subr.mxu1 %v2941_v11 }
 0x36e   :  { %1217 = vmatpush1.msra.mxu0 %v2944_v63  ;;  %1288 = vmatpush1.msra.mxu1 %v2947_v3  ;;  %v2962_v63 = vld [vmem:[#allocation3 + $0x108] sm:$0xff]  ;;  %v2965_v3 = vld [vmem:[#allocation3 + $0x118] sm:$0xff] }
 0x36f   :  { %1218 = vmatprep.subr.mxu0 %v2950_v54  ;;  %1289 = vmatprep.subr.mxu1 %v2953_v28 }
 0x370   :  { %1219 = vmatpush1.msra.mxu0 %v2956_v30  ;;  %1290 = vmatpush1.msra.mxu1 %v2959_v31 }
 0x371   :  { %1220 = vmatprep.subr.mxu0 %v2962_v63  ;;  %1291 = vmatprep.subr.mxu1 %v2965_v3 }
 0x372   :  { %1221 = vmatpush1.msra.mxu0 %v2454_v36  ;;  %1292 = vmatpush1.msra.mxu1 %v2456_v37  ;;  %v3511_v37 = vld [vmem:[#allocation55_spill] sm:$0xff] }
 0x373   :  { %1222 = vmatprep.subr.mxu0 %v2462_v39  ;;  %1293 = vmatprep.subr.mxu1 %v2464_v40 }
 0x374   :  { %1223 = vmatpush1.msra.mxu0 %v2468_v41  ;;  %1294 = vmatpush1.msra.mxu1 %v2470_v42  ;;  %v3512_v42 = vld [vmem:[#allocation57_spill] sm:$0xff] }
 0x375   :  { %1224 = vmatprep.subr.mxu0 %v2472_v43  ;;  %1295 = vmatprep.subr.mxu1 %v2474_v44 }
 0x376   :  { %1225 = vmatpush1.msra.mxu0 %v2480_v45  ;;  %1296 = vmatpush1.msra.mxu1 %v2482_v46  ;;  %v3513_v46 = vld [vmem:[#allocation56_spill] sm:$0xff] }
 0x377   :  { %1226 = vmatprep.subr.mxu0 %v2488_v48  ;;  %1297 = vmatprep.subr.mxu1 %v2490_v49 }
 0x378   :  { %1227 = vmatpush1.msra.mxu0 %v2494_v50  ;;  %1298 = vmatpush1.msra.mxu1 %v2496_v51  ;;  %v3514_v51 = vld [vmem:[#allocation58_spill] sm:$0xff] }
 0x379   :  { %1228 = vmatprep.subr.mxu0 %v3458_v2  ;;  %1299 = vmatprep.subr.mxu1 %v3459_v62 }
 0x37a   :  { %1229 = vmatpush1.msra.mxu0 %v3460_v29  ;;  %1300 = vmatpush1.msra.mxu1 %v3485_v5 }
 0x37b   :  { %1230 = vmatprep.subr.mxu0 %v3486_v6  ;;  %1301 = vmatprep.subr.mxu1 %v3487_v7 }
 0x37c   :  { %1231 = vmatpush1.msra.mxu0 %v3488_v8  ;;  %1302 = vmatpush1.msra.mxu1 %v3489_v9 }
 0x37d   :  { %1232 = vmatprep.subr.mxu0 %v3490_v10  ;;  %1303 = vmatprep.subr.mxu1 %v3491_v12 }
 0x37e   :  { %1233 = vmatpush1.msra.mxu0 %v3492_v13  ;;  %1304 = vmatpush1.msra.mxu1 %v3493_v14 }
 0x37f   :  { %1234 = vmatprep.subr.mxu0 %v3494_v15  ;;  %1305 = vmatprep.subr.mxu1 %v3495_v16 }
 0x380   :  { %1235 = vmatpush1.msra.mxu0 %v3496_v17  ;;  %1306 = vmatpush1.msra.mxu1 %v3497_v18 }
 0x381   :  { %1236 = vmatprep.subr.mxu0 %v3498_v19  ;;  %1307 = vmatprep.subr.mxu1 %v3499_v21  ;;  %v3515_v19 = vld [vmem:[#allocation29_spill] sm:$0xff] }
 0x382   :  { %1237 = vmatpush1.msra.mxu0 %v3500_v22  ;;  %1270 = vmatprep.mubr.f32.mxu0 %v3501_v23  ;;  %v3516_v21 = vld [vmem:[#allocation25_spill] sm:$0xff]  ;;  %v3042_v22 = vld [vmem:[#allocation3 + $0x100] sm:$0xff] }
 0x383   :  { %1308 = vmatpush1.msra.mxu1 %v3502_v24  ;;  %1341 = vmatprep.mubr.f32.mxu1 %v3501_v23  ;;  %v3045_v24 = vld [vmem:[#allocation3 + $0x110] sm:$0xff] }
 0x384   :  { %1385 = vmatprep.subr.mxu0 %v2870_v25  ;;  %1456 = vmatprep.subr.mxu1 %v2873_v26 }
 0x423   :  { %v1093_v36 = vpop.f32.mrf.mxu0  ;;  %v1164_v45 = vpop.f32.mrf.mxu1 }
 0x424   :  { %v1169_v39 = vadd.f32 %v1093_v36, %v3511_v37  ;;  %v1171_v48 = vadd.f32 %v1164_v45, %v3513_v46  ;;  %v3051_v36 = vld [vmem:[#allocation3 + $0xf8] sm:$0xff]  ;;  %v3054_v37 = vld [vmem:[#allocation3 + $0xe0] sm:$0xff] }
 0x425   :  { %v1095_v40 = vpop.f32.mrf.mxu0  ;;  %v1166_v49 = vpop.f32.mrf.mxu1  ;;  %v3075_v45 = vld [vmem:[#allocation3 + $0xb8] sm:$0xff]  ;;  %v3078_v46 = vld [vmem:[#allocation3 + $0xa0] sm:$0xff] }
 0x426   :  { %v1981_v41 = vmul.f32 -1.442695, %v1169_v39  ;;  %v1170_v43 = vadd.f32 %v1095_v40, %v3512_v42  ;;  %v1983_v50 = vmul.f32 -1.442695, %v1171_v48  ;;  %v1172_v2 = vadd.f32 %v1166_v49, %v3514_v51  ;;  %v3057_v39 = vld [vmem:[#allocation3 + $0xf0] sm:$0xff]  ;;  %v3060_v40 = vld [vmem:[#allocation3 + $0xc8] sm:$0xff] }
 0x427   :  { %v3066_v42 = vld [vmem:[#allocation3 + $0xc0] sm:$0xff]  ;;  %v3081_v48 = vld [vmem:[#allocation3 + $0xb0] sm:$0xff]  ;;  %v3084_v49 = vld [vmem:[#allocation3 + $0x88] sm:$0xff] }
 0x428   :  { %2054 = vpow2.f32 %v1981_v41  ;;  %v1982_v44 = vmul.f32 -1.442695, %v1170_v43  ;;  %v3063_v41 = vld [vmem:[#allocation3 + $0xd8] sm:$0xff]  ;;  %v3069_v43 = vld [vmem:[#allocation3 + $0xd0] sm:$0xff]  ;;  %v3090_v51 = vld [vmem:[#allocation3 + $0x80] sm:$0xff] }
 0x42a   :  { %2056 = vpow2.f32 %v1982_v44  ;;  %v3072_v44 = vld [vmem:[#allocation3 + $0xa8] sm:$0xff] }
 0x42b   :  { %2058 = vpow2.f32 %v1983_v50  ;;  %v3087_v50 = vld [vmem:[#allocation3 + $0x98] sm:$0xff] }
 0x42c   :  { %2060 = vtanh.f32 %v1172_v2  ;;  %v3093_v2 = vld [vmem:[#allocation3 + $0x90] sm:$0xff] }
 0x42d   :  { %3517 = vst [vmem:[#allocation26_spill] sm:$0xff] %v3093_v2 }
 0x435   :  { %v2055_v62 = vpop.eup %2054 }
 0x436   :  { %v1182_v29 = vadd.f32 1.0, %v2055_v62  ;;  %v3096_v62 = vld [vmem:[#allocation3 + $0x68] sm:$0xff] }
 0x437   :  { %v2057_v5 = vpop.eup %2056  ;;  %3518 = vst [vmem:[#allocation47_spill] sm:$0xff] %v3096_v62 }
 0x438   :  { %2062 = vrcp.f32 %v1182_v29  ;;  %v1183_v6 = vadd.f32 1.0, %v2057_v5  ;;  %v2059_v7 = vpop.eup %2058  ;;  %v3099_v29 = vld [vmem:[#allocation3 + $0x78] sm:$0xff]  ;;  %v3102_v5 = vld [vmem:[#allocation3 + $0x60] sm:$0xff] }
 0x439   :  { %v2061_v8 = vpop.eup %2060  ;;  %v1184_v13 = vadd.f32 1.0, %v2059_v7  ;;  %3519 = vst [vmem:[#allocation49_spill] sm:$0xff] %v3099_v29  ;;  %3520 = vst [vmem:[#allocation48_spill] sm:$0xff] %v3102_v5  ;;  %v3108_v7 = vld [vmem:[#allocation3 + $0x48] sm:$0xff] }
 0x43a   :  { %2064 = vrcp.f32 %v1183_v6  ;;  %v3105_v6 = vld [vmem:[#allocation3 + $0x70] sm:$0xff]  ;;  %3522 = vst [vmem:[#allocation30_spill] sm:$0xff] %v3108_v7 }
 0x43b   :  { %2066 = vrcp.f32 %v1184_v13  ;;  %3521 = vst [vmem:[#allocation50_spill] sm:$0xff] %v3105_v6  ;;  %v3123_v13 = vld [vmem:[#allocation3 + $0x38] sm:$0xff] }
 0x43c   :  { %3527 = vst [vmem:[#allocation35_spill] sm:$0xff] %v3123_v13 }
 0x445   :  { %v2063_v9 = vpop.eup %2062 }
 0x446   :  { %v1193_v10 = vmul.f32 %v2063_v9, %v2061_v8  ;;  %v3111_v8 = vld [vmem:[#allocation3 + $0x58] sm:$0xff]  ;;  %v3114_v9 = vld [vmem:[#allocation3 + $0x40] sm:$0xff] }
 0x447   :  { %v2065_v12 = vpop.eup %2064  ;;  %3523 = vst [vmem:[#allocation31_spill] sm:$0xff] %v3111_v8  ;;  %3524 = vst [vmem:[#allocation32_spill] sm:$0xff] %v3114_v9 }
 0x448   :  { %v1192_v14 = vmul.f32 %v2065_v12, %v2881_v27  ;;  %v2067_v16 = vpop.eup %2066  ;;  %v3048_v27 = vld [vmem:[#allocation3 + $0xe8] sm:$0xff] }
 0x449   :  { %v3120_v12 = vld [vmem:[#allocation3 + $0x28] sm:$0xff] }
 0x44a   :  { %v3011_v15 = vadd.f32 %v1193_v10, %v1192_v14  ;;  %v3117_v10 = vld [vmem:[#allocation3 + $0x50] sm:$0xff]  ;;  %3526 = vst [vmem:[#allocation34_spill] sm:$0xff] %v3120_v12  ;;  %v3126_v14 = vld [vmem:[#allocation3 + $0x20] sm:$0xff] }
 0x44b   :  { %3525 = vst [vmem:[#allocation33_spill] sm:$0xff] %v3117_v10  ;;  %3528 = vst [vmem:[#allocation36_spill] sm:$0xff] %v3126_v14 }
 0x44c   :  { %2068 = vtanh.f32 %v3011_v15 }
 0x459   :  { %v2069_v17 = vpop.eup %2068 }
 0x45a   :  { %v1196_v18 = vmul.f32 %v2069_v17, %v2067_v16  ;;  %v3129_v16 = vld [vmem:[#allocation3 + $0x30] sm:$0xff]  ;;  %v3132_v17 = vld [vmem:[#allocation3 + $0x8] sm:$0xff] }
 0x45b   :  { %3529 = vst [vmem:[#allocation37_spill] sm:$0xff] %v3129_v16  ;;  %3530 = vst [vmem:[#allocation38_spill] sm:$0xff] %v3132_v17 }
 0x45c   :  { %1198 = vst [vmem:[#allocation11 + $0x18] sm:$0xff] %v1196_v18  ;;  %1271 = vmatmul.mubr.f32.vlgmr.msra.gmra.mxu0 %v1196_v18  ;;  %1342 = vmatmul.mubr.f32.vlgmr.msra.gmra.mxu1 %v1196_v18  ;;  %v3135_v18 = vld [vmem:[#allocation3 + $0x18] sm:$0xff] }
 0x45d   :  { %1386 = vmatpush1.msra.mxu0 %v2884_v32  ;;  %1457 = vmatpush1.msra.mxu1 %v2887_v33  ;;  %3531 = vst [vmem:[#allocation39_spill] sm:$0xff] %v3135_v18 }
 0x45e   :  { %1387 = vmatprep.subr.mxu0 %v2890_v57  ;;  %1458 = vmatprep.subr.mxu1 %v2893_v34 }
 0x45f   :  { %1388 = vmatpush1.msra.mxu0 %v2896_v35  ;;  %1459 = vmatpush1.msra.mxu1 %v2899_v55 }
 0x460   :  { %1389 = vmatprep.subr.mxu0 %v2902_v47  ;;  %1460 = vmatprep.subr.mxu1 %v2905_v0 }
 0x461   :  { %1390 = vmatpush1.msra.mxu0 %v2908_v60  ;;  %1461 = vmatpush1.msra.mxu1 %v2911_v1 }
 0x462   :  { %1391 = vmatprep.subr.mxu0 %v2914_v59  ;;  %1462 = vmatprep.subr.mxu1 %v2917_v20 }
 0x463   :  { %1392 = vmatpush1.msra.mxu0 %v2920_v58  ;;  %1463 = vmatpush1.msra.mxu1 %v2923_v56 }
 0x464   :  { %1393 = vmatprep.subr.mxu0 %v2926_v53  ;;  %1464 = vmatprep.subr.mxu1 %v2929_v61 }
 0x465   :  { %1394 = vmatpush1.msra.mxu0 %v2932_v52  ;;  %1465 = vmatpush1.msra.mxu1 %v2935_v4 }
 0x466   :  { %1395 = vmatprep.subr.mxu0 %v2938_v38  ;;  %1466 = vmatprep.subr.mxu1 %v2941_v11 }
 0x467   :  { %1396 = vmatpush1.msra.mxu0 %v3515_v19  ;;  %1467 = vmatpush1.msra.mxu1 %v3516_v21 }
 0x468   :  { %1397 = vmatprep.subr.mxu0 %v2950_v54  ;;  %1468 = vmatprep.subr.mxu1 %v2953_v28 }
 0x469   :  { %1398 = vmatpush1.msra.mxu0 %v2956_v30  ;;  %1469 = vmatpush1.msra.mxu1 %v2959_v31 }
 0x46a   :  { %1399 = vmatprep.subr.mxu0 %v2962_v63  ;;  %1470 = vmatprep.subr.mxu1 %v2965_v3 }
 0x46b   :  { %1400 = vmatpush1.msra.mxu0 %v3042_v22  ;;  %1471 = vmatpush1.msra.mxu1 %v3045_v24 }
 0x46c   :  { %1401 = vmatprep.subr.mxu0 %v3048_v27  ;;  %1472 = vmatprep.subr.mxu1 %v3051_v36 }
 0x46d   :  { %1402 = vmatpush1.msra.mxu0 %v3054_v37  ;;  %1473 = vmatpush1.msra.mxu1 %v3057_v39 }
 0x46e   :  { %1403 = vmatprep.subr.mxu0 %v3060_v40  ;;  %1474 = vmatprep.subr.mxu1 %v3063_v41 }
 0x46f   :  { %1404 = vmatpush1.msra.mxu0 %v3066_v42  ;;  %1475 = vmatpush1.msra.mxu1 %v3069_v43 }
 0x470   :  { %1405 = vmatprep.subr.mxu0 %v3072_v44  ;;  %1476 = vmatprep.subr.mxu1 %v3075_v45 }
 0x471   :  { %1406 = vmatpush1.msra.mxu0 %v3078_v46  ;;  %1477 = vmatpush1.msra.mxu1 %v3081_v48 }
 0x472   :  { %1407 = vmatprep.subr.mxu0 %v3084_v49  ;;  %1478 = vmatprep.subr.mxu1 %v3087_v50 }
 0x473   :  { %1408 = vmatpush1.msra.mxu0 %v3090_v51  ;;  %1479 = vmatpush1.msra.mxu1 %v3093_v2 }
 0x474   :  { %1409 = vmatprep.subr.mxu0 %v3096_v62  ;;  %1480 = vmatprep.subr.mxu1 %v3099_v29 }
 0x475   :  { %1410 = vmatpush1.msra.mxu0 %v3102_v5  ;;  %1481 = vmatpush1.msra.mxu1 %v3105_v6  ;;  %v3536_v6 = vld [vmem:[#allocation60_spill] sm:$0xff] }
 0x476   :  { %1411 = vmatprep.subr.mxu0 %v3108_v7  ;;  %1482 = vmatprep.subr.mxu1 %v3111_v8 }
 0x477   :  { %1412 = vmatpush1.msra.mxu0 %v3114_v9  ;;  %1483 = vmatpush1.msra.mxu1 %v3117_v10  ;;  %v3535_v9 = vld [vmem:[#allocation61_spill] sm:$0xff] }
 0x478   :  { %1413 = vmatprep.subr.mxu0 %v3120_v12  ;;  %1484 = vmatprep.subr.mxu1 %v3123_v13  ;;  %v3138_v12 = vld [vmem:[#allocation3] sm:$0xff]  ;;  %v3142_v13 = vld [vmem:[#allocation3 + $0x10] sm:$0xff] }
 0x479   :  { %1414 = vmatpush1.msra.mxu0 %v3126_v14  ;;  %1485 = vmatpush1.msra.mxu1 %v3129_v16  ;;  %3532 = vst [vmem:[#allocation40_spill] sm:$0xff] %v3138_v12  ;;  %3533 = vst [vmem:[#allocation41_spill] sm:$0xff] %v3142_v13  ;;  %v3534_v16 = vld [vmem:[#allocation59_spill] sm:$0xff] }
 0x47a   :  { %1415 = vmatprep.subr.mxu0 %v3132_v17  ;;  %1486 = vmatprep.subr.mxu1 %v3135_v18 }
 0x47b   :  { %1416 = vmatpush1.msra.mxu0 %v3138_v12  ;;  %1449 = vmatprep.mubr.f32.mxu0 %v3501_v23 }
 0x47c   :  { %1487 = vmatpush1.msra.mxu1 %v3142_v13  ;;  %1520 = vmatprep.mubr.f32.mxu1 %v3501_v23  ;;  %v3537_v23 = vld [vmem:[#allocation62_spill] sm:$0xff] }
 0x47d   :  { %1564 = vmatprep.subr.mxu0 %v2870_v25  ;;  %1635 = vmatprep.subr.mxu1 %v2873_v26 }
 0x51c   :  { %v1272_v17 = vpop.f32.mrf.mxu0  ;;  %v1343_v7 = vpop.f32.mrf.mxu1 }
 0x51d   :  { %v1348_v14 = vadd.f32 %v1272_v17, %v3534_v16  ;;  %v1350_v5 = vadd.f32 %v1343_v7, %v3536_v6 }
 0x51e   :  { %v1274_v18 = vpop.f32.mrf.mxu0  ;;  %v1345_v13 = vpop.f32.mrf.mxu1 }
 0x51f   :  { %v1984_v10 = vmul.f32 -1.442695, %v1348_v14  ;;  %v1349_v8 = vadd.f32 %v1274_v18, %v3535_v9  ;;  %v1986_v29 = vmul.f32 -1.442695, %v1350_v5  ;;  %v1351_v62 = vadd.f32 %v1345_v13, %v3537_v23  ;;  %v3542_v5 = vld [vmem:[#allocation50_spill] sm:$0xff]  ;;  %v3544_v18 = vld [vmem:[#allocation31_spill] sm:$0xff] }
 0x520   :  { %v3543_v13 = vld [vmem:[#allocation30_spill] sm:$0xff] }
 0x521   :  { %2070 = vpow2.f32 %v1984_v10  ;;  %v1985_v12 = vmul.f32 -1.442695, %v1349_v8 }
 0x523   :  { %2072 = vpow2.f32 %v1985_v12 }
 0x524   :  { %2074 = vpow2.f32 %v1986_v29 }
 0x525   :  { %2076 = vtanh.f32 %v1351_v62  ;;  %v3541_v62 = vld [vmem:[#allocation48_spill] sm:$0xff] }
 0x52e   :  { %v2071_v25 = vpop.eup %2070 }
 0x52f   :  { %v1361_v2 = vadd.f32 1.0, %v2071_v25 }
 0x530   :  { %v2073_v26 = vpop.eup %2072 }
 0x531   :  { %2078 = vrcp.f32 %v1361_v2  ;;  %v1362_v16 = vadd.f32 1.0, %v2073_v26  ;;  %v2075_v14 = vpop.eup %2074  ;;  %v3538_v26 = vld [vmem:[#allocation26_spill] sm:$0xff]  ;;  %v3540_v2 = vld [vmem:[#allocation49_spill] sm:$0xff] }
 0x532   :  { %v2077_v9 = vpop.eup %2076  ;;  %v1363_v17 = vadd.f32 1.0, %v2075_v14  ;;  %v3546_v14 = vld [vmem:[#allocation33_spill] sm:$0xff] }
 0x533   :  { %2080 = vrcp.f32 %v1362_v16  ;;  %v3545_v16 = vld [vmem:[#allocation32_spill] sm:$0xff] }
 0x534   :  { %2082 = vrcp.f32 %v1363_v17  ;;  %v3551_v17 = vld [vmem:[#allocation38_spill] sm:$0xff] }
 0x53e   :  { %v2079_v10 = vpop.eup %2078 }
 0x53f   :  { %v1372_v8 = vmul.f32 %v2079_v10, %v2077_v9  ;;  %v3547_v9 = vld [vmem:[#allocation34_spill] sm:$0xff]  ;;  %v3548_v10 = vld [vmem:[#allocation35_spill] sm:$0xff] }
 0x540   :  { %v2081_v12 = vpop.eup %2080 }
 0x541   :  { %v1371_v6 = vmul.f32 %v2081_v12, %v3011_v15  ;;  %v2083_v23 = vpop.eup %2082  ;;  %v3539_v15 = vld [vmem:[#allocation47_spill] sm:$0xff]  ;;  %v3550_v12 = vld [vmem:[#allocation37_spill] sm:$0xff] }
 0x543   :  { %v3153_v7 = vadd.f32 %v1372_v8, %v1371_v6  ;;  %v3549_v8 = vld [vmem:[#allocation36_spill] sm:$0xff]  ;;  %v3552_v6 = vld [vmem:[#allocation39_spill] sm:$0xff] }
 0x545   :  { %2084 = vtanh.f32 %v3153_v7 }
 0x552   :  { %v2085_v25 = vpop.eup %2084 }
 0x553   :  { %v1375_v29 = vmul.f32 %v2085_v25, %v2083_v23  ;;  %v3553_v23 = vld [vmem:[#allocation40_spill] sm:$0xff]  ;;  %v3554_v25 = vmov 0.0  }
 0x555   :  { %1377 = vst [vmem:[#allocation11 + $0x20] sm:$0xff] %v1375_v29  ;;  %1450 = vmatmul.mubr.f32.vlgmr.msra.gmra.mxu0 %v1375_v29  ;;  %1521 = vmatmul.mubr.f32.vlgmr.msra.gmra.mxu1 %v1375_v29  ;;  %v3555_v29 = vld [vmem:[#allocation41_spill] sm:$0xff] }
 0x556   :  { %1565 = vmatpush1.msra.mxu0 %v2884_v32  ;;  %1636 = vmatpush1.msra.mxu1 %v2887_v33 }
 0x557   :  { %1566 = vmatprep.subr.mxu0 %v2890_v57  ;;  %1637 = vmatprep.subr.mxu1 %v2893_v34 }
 0x558   :  { %1567 = vmatpush1.msra.mxu0 %v2896_v35  ;;  %1638 = vmatpush1.msra.mxu1 %v2899_v55 }
 0x559   :  { %1568 = vmatprep.subr.mxu0 %v2902_v47  ;;  %1639 = vmatprep.subr.mxu1 %v2905_v0 }
 0x55a   :  { %1569 = vmatpush1.msra.mxu0 %v2908_v60  ;;  %1640 = vmatpush1.msra.mxu1 %v2911_v1 }
 0x55b   :  { %1570 = vmatprep.subr.mxu0 %v2914_v59  ;;  %1641 = vmatprep.subr.mxu1 %v2917_v20 }
 0x55c   :  { %1571 = vmatpush1.msra.mxu0 %v2920_v58  ;;  %1642 = vmatpush1.msra.mxu1 %v2923_v56 }
 0x55d   :  { %1572 = vmatprep.subr.mxu0 %v2926_v53  ;;  %1643 = vmatprep.subr.mxu1 %v2929_v61 }
 0x55e   :  { %1573 = vmatpush1.msra.mxu0 %v2932_v52  ;;  %1644 = vmatpush1.msra.mxu1 %v2935_v4 }
 0x55f   :  { %1574 = vmatprep.subr.mxu0 %v2938_v38  ;;  %1645 = vmatprep.subr.mxu1 %v2941_v11 }
 0x560   :  { %1575 = vmatpush1.msra.mxu0 %v3515_v19  ;;  %1646 = vmatpush1.msra.mxu1 %v3516_v21 }
 0x561   :  { %1576 = vmatprep.subr.mxu0 %v2950_v54  ;;  %1647 = vmatprep.subr.mxu1 %v2953_v28 }
 0x562   :  { %1577 = vmatpush1.msra.mxu0 %v2956_v30  ;;  %1648 = vmatpush1.msra.mxu1 %v2959_v31 }
 0x563   :  { %1578 = vmatprep.subr.mxu0 %v2962_v63  ;;  %1649 = vmatprep.subr.mxu1 %v2965_v3 }
 0x564   :  { %1579 = vmatpush1.msra.mxu0 %v3042_v22  ;;  %1650 = vmatpush1.msra.mxu1 %v3045_v24 }
 0x565   :  { %1580 = vmatprep.subr.mxu0 %v3048_v27  ;;  %1651 = vmatprep.subr.mxu1 %v3051_v36 }
 0x566   :  { %1581 = vmatpush1.msra.mxu0 %v3054_v37  ;;  %1652 = vmatpush1.msra.mxu1 %v3057_v39 }
 0x567   :  { %1582 = vmatprep.subr.mxu0 %v3060_v40  ;;  %1653 = vmatprep.subr.mxu1 %v3063_v41 }
 0x568   :  { %1583 = vmatpush1.msra.mxu0 %v3066_v42  ;;  %1654 = vmatpush1.msra.mxu1 %v3069_v43 }
 0x569   :  { %1584 = vmatprep.subr.mxu0 %v3072_v44  ;;  %1655 = vmatprep.subr.mxu1 %v3075_v45 }
 0x56a   :  { %1585 = vmatpush1.msra.mxu0 %v3078_v46  ;;  %1656 = vmatpush1.msra.mxu1 %v3081_v48 }
 0x56b   :  { %1586 = vmatprep.subr.mxu0 %v3084_v49  ;;  %1657 = vmatprep.subr.mxu1 %v3087_v50 }
 0x56c   :  { %1587 = vmatpush1.msra.mxu0 %v3090_v51  ;;  %1658 = vmatpush1.msra.mxu1 %v3538_v26 }
 0x56d   :  { %1588 = vmatprep.subr.mxu0 %v3539_v15  ;;  %1659 = vmatprep.subr.mxu1 %v3540_v2 }
 0x56e   :  { %1589 = vmatpush1.msra.mxu0 %v3541_v62  ;;  %1660 = vmatpush1.msra.mxu1 %v3542_v5  ;;  %v3560_v5 = vld [vmem:[#allocation64_spill] sm:$0xff] }
 0x56f   :  { %1590 = vmatprep.subr.mxu0 %v3543_v13  ;;  %1661 = vmatprep.subr.mxu1 %v3544_v18 }
 0x570   :  { %1591 = vmatpush1.msra.mxu0 %v3545_v16  ;;  %1662 = vmatpush1.msra.mxu1 %v3546_v14  ;;  %v3556_v14 = vld [vmem:[#allocation27_spill] sm:$0xff] }
 0x571   :  { %1592 = vmatprep.subr.mxu0 %v3547_v9  ;;  %1663 = vmatprep.subr.mxu1 %v3548_v10  ;;  %v3557_v9 = vld [vmem:[#allocation28_spill] sm:$0xff] }
 0x572   :  { %1593 = vmatpush1.msra.mxu0 %v3549_v8  ;;  %1664 = vmatpush1.msra.mxu1 %v3550_v12  ;;  %v3558_v8 = vld [vmem:[#allocation63_spill] sm:$0xff] }
 0x573   :  { %1594 = vmatprep.subr.mxu0 %v3551_v17  ;;  %1665 = vmatprep.subr.mxu1 %v3552_v6  ;;  %v3559_v17 = vld [vmem:[#allocation65_spill] sm:$0xff] }
 0x574   :  { %1595 = vmatpush1.msra.mxu0 %v3553_v23  ;;  %1628 = vmatprep.mubr.f32.mxu0 %v3554_v25 }
 0x575   :  { %1666 = vmatpush1.msra.mxu1 %v3555_v29  ;;  %1699 = vmatprep.mubr.f32.mxu1 %v3554_v25  ;;  %v3561_v25 = vld [vmem:[#allocation66_spill] sm:$0xff] }
 0x576   :  { %1743 = vmatprep.subr.mxu0 %v3556_v14  ;;  %1814 = vmatprep.subr.mxu1 %v3557_v9 }
 0x615   :  { %v1451_v10 = vpop.f32.mrf.mxu0  ;;  %v1522_v23 = vpop.f32.mrf.mxu1 }
 0x616   :  { %v1527_v16 = vadd.f32 %v1451_v10, %v3558_v8  ;;  %v1529_v62 = vadd.f32 %v1522_v23, %v3560_v5 }
 0x617   :  { %v1453_v12 = vpop.f32.mrf.mxu0  ;;  %v1524_v29 = vpop.f32.mrf.mxu1 }
 0x618   :  { %v1987_v18 = vmul.f32 -1.442695, %v1527_v16  ;;  %v1528_v13 = vadd.f32 %v1453_v12, %v3559_v17  ;;  %v1989_v2 = vmul.f32 -1.442695, %v1529_v62  ;;  %v1530_v15 = vadd.f32 %v1524_v29, %v3561_v25  ;;  %v3584_v29 = vld [vmem:[#allocation71_spill] sm:$0xff] }
 0x61a   :  { %2086 = vpow2.f32 %v1987_v18  ;;  %v1988_v6 = vmul.f32 -1.442695, %v1528_v13 }
 0x61c   :  { %2088 = vpow2.f32 %v1988_v6 }
 0x61d   :  { %2090 = vpow2.f32 %v1989_v2 }
 0x61e   :  { %2092 = vtanh.f32 %v1530_v15 }
 0x627   :  { %v2087_v14 = vpop.eup %2086 }
 0x628   :  { %v1540_v26 = vadd.f32 1.0, %v2087_v14 }
 0x629   :  { %v2089_v9 = vpop.eup %2088 }
 0x62a   :  { %2094 = vrcp.f32 %v1540_v26  ;;  %v1541_v10 = vadd.f32 1.0, %v2089_v9  ;;  %v2091_v16 = vpop.eup %2090 }
 0x62b   :  { %v2093_v8 = vpop.eup %2092  ;;  %v1542_v17 = vadd.f32 1.0, %v2091_v16  ;;  %v3585_v16 = vld [vmem:[#allocation73_spill] sm:$0xff] }
 0x62c   :  { %2096 = vrcp.f32 %v1541_v10 }
 0x62d   :  { %2098 = vrcp.f32 %v1542_v17 }
 0x637   :  { %v2095_v18 = vpop.eup %2094 }
 0x638   :  { %v1551_v13 = vmul.f32 %v2095_v18, %v2093_v8 }
 0x639   :  { %v2097_v12 = vpop.eup %2096 }
 0x63a   :  { %v1550_v5 = vmul.f32 %v2097_v12, %v3153_v7  ;;  %v2099_v62 = vpop.eup %2098  ;;  %v3586_v12 = vld [vmem:[#allocation72_spill] sm:$0xff] }
 0x63c   :  { %v3227_v6 = vadd.f32 %v1551_v13, %v1550_v5 }
 0x63e   :  { %2100 = vtanh.f32 %v3227_v6 }
 0x64b   :  { %v2101_v2 = vpop.eup %2100 }
 0x64c   :  { %v1554_v23 = vmul.f32 %v2101_v2, %v2099_v62  ;;  %v3587_v62 = vld [vmem:[#allocation74_spill] sm:$0xff] }
 0x64e   :  { %1556 = vst [vmem:[#allocation11 + $0x28] sm:$0xff] %v1554_v23  ;;  %1629 = vmatmul.mubr.f32.vlgmr.msra.gmra.mxu0 %v1554_v23  ;;  %1700 = vmatmul.mubr.f32.vlgmr.msra.gmra.mxu1 %v1554_v23 }
 0x64f   :  { %1744 = vmatpush1.msra.mxu0 %v2884_v32  ;;  %1815 = vmatpush1.msra.mxu1 %v2887_v33  ;;  %v3562_v32 = vld [vmem:[#allocation26_spill] sm:$0xff]  ;;  %v3563_v33 = vld [vmem:[#allocation47_spill] sm:$0xff] }
 0x650   :  { %1745 = vmatprep.subr.mxu0 %v2890_v57  ;;  %1816 = vmatprep.subr.mxu1 %v2893_v34  ;;  %v3564_v57 = vld [vmem:[#allocation49_spill] sm:$0xff]  ;;  %v3565_v34 = vld [vmem:[#allocation48_spill] sm:$0xff] }
 0x651   :  { %1746 = vmatpush1.msra.mxu0 %v2896_v35  ;;  %1817 = vmatpush1.msra.mxu1 %v2899_v55  ;;  %v3566_v35 = vld [vmem:[#allocation50_spill] sm:$0xff] }
 0x652   :  { %1747 = vmatprep.subr.mxu0 %v2902_v47  ;;  %1818 = vmatprep.subr.mxu1 %v2905_v0  ;;  %v3567_v55 = vld [vmem:[#allocation30_spill] sm:$0xff]  ;;  %v3568_v47 = vld [vmem:[#allocation31_spill] sm:$0xff]  ;;  %v3569_v0 = vld [vmem:[#allocation32_spill] sm:$0xff] }
 0x653   :  { %1748 = vmatpush1.msra.mxu0 %v2908_v60  ;;  %1819 = vmatpush1.msra.mxu1 %v2911_v1  ;;  %v3570_v60 = vld [vmem:[#allocation33_spill] sm:$0xff]  ;;  %v3571_v1 = vld [vmem:[#allocation34_spill] sm:$0xff] }
 0x654   :  { %1749 = vmatprep.subr.mxu0 %v2914_v59  ;;  %1820 = vmatprep.subr.mxu1 %v2917_v20  ;;  %v3572_v59 = vld [vmem:[#allocation35_spill] sm:$0xff]  ;;  %v3573_v20 = vld [vmem:[#allocation36_spill] sm:$0xff] }
 0x655   :  { %1750 = vmatpush1.msra.mxu0 %v2920_v58  ;;  %1821 = vmatpush1.msra.mxu1 %v2923_v56  ;;  %v3574_v58 = vld [vmem:[#allocation37_spill] sm:$0xff]  ;;  %v3575_v56 = vld [vmem:[#allocation38_spill] sm:$0xff] }
 0x656   :  { %1751 = vmatprep.subr.mxu0 %v2926_v53  ;;  %1822 = vmatprep.subr.mxu1 %v2929_v61  ;;  %v3576_v53 = vld [vmem:[#allocation39_spill] sm:$0xff]  ;;  %v3577_v61 = vld [vmem:[#allocation40_spill] sm:$0xff] }
 0x657   :  { %1752 = vmatpush1.msra.mxu0 %v2932_v52  ;;  %1823 = vmatpush1.msra.mxu1 %v2935_v4  ;;  %v3578_v52 = vmov 0.0   ;;  %v3579_v4 = vld [vmem:[#allocation41_spill] sm:$0xff] }
 0x658   :  { %1753 = vmatprep.subr.mxu0 %v2938_v38  ;;  %1824 = vmatprep.subr.mxu1 %v2941_v11  ;;  %v3580_v11 = vld [vmem:[#allocation67_spill] sm:$0xff] }
 0x659   :  { %1754 = vmatpush1.msra.mxu0 %v3515_v19  ;;  %1825 = vmatpush1.msra.mxu1 %v3516_v21  ;;  %v3582_v21 = vld [vmem:[#allocation68_spill] sm:$0xff] }
 0x65a   :  { %1755 = vmatprep.subr.mxu0 %v2950_v54  ;;  %1826 = vmatprep.subr.mxu1 %v2953_v28  ;;  %v3581_v28 = vld [vmem:[#allocation69_spill] sm:$0xff] }
 0x65b   :  { %1756 = vmatpush1.msra.mxu0 %v2956_v30  ;;  %1827 = vmatpush1.msra.mxu1 %v2959_v31 }
 0x65c   :  { %1757 = vmatprep.subr.mxu0 %v2962_v63  ;;  %1828 = vmatprep.subr.mxu1 %v2965_v3 }
 0x65d   :  { %1758 = vmatpush1.msra.mxu0 %v3042_v22  ;;  %1829 = vmatpush1.msra.mxu1 %v3045_v24 }
 0x65e   :  { %1759 = vmatprep.subr.mxu0 %v3048_v27  ;;  %1830 = vmatprep.subr.mxu1 %v3051_v36  ;;  %v3583_v36 = vld [vmem:[#allocation70_spill] sm:$0xff] }
 0x65f   :  { %1760 = vmatpush1.msra.mxu0 %v3054_v37  ;;  %1831 = vmatpush1.msra.mxu1 %v3057_v39 }
 0x660   :  { %1761 = vmatprep.subr.mxu0 %v3060_v40  ;;  %1832 = vmatprep.subr.mxu1 %v3063_v41 }
 0x661   :  { %1762 = vmatpush1.msra.mxu0 %v3066_v42  ;;  %1833 = vmatpush1.msra.mxu1 %v3069_v43 }
 0x662   :  { %1763 = vmatprep.subr.mxu0 %v3072_v44  ;;  %1834 = vmatprep.subr.mxu1 %v3075_v45 }
 0x663   :  { %1764 = vmatpush1.msra.mxu0 %v3078_v46  ;;  %1835 = vmatpush1.msra.mxu1 %v3081_v48 }
 0x664   :  { %1765 = vmatprep.subr.mxu0 %v3084_v49  ;;  %1836 = vmatprep.subr.mxu1 %v3087_v50 }
 0x665   :  { %1766 = vmatpush1.msra.mxu0 %v3090_v51  ;;  %1837 = vmatpush1.msra.mxu1 %v3562_v32 }
 0x666   :  { %1767 = vmatprep.subr.mxu0 %v3563_v33  ;;  %1838 = vmatprep.subr.mxu1 %v3564_v57 }
 0x667   :  { %1768 = vmatpush1.msra.mxu0 %v3565_v34  ;;  %1839 = vmatpush1.msra.mxu1 %v3566_v35 }
 0x668   :  { %1769 = vmatprep.subr.mxu0 %v3567_v55  ;;  %1840 = vmatprep.subr.mxu1 %v3568_v47 }
 0x669   :  { %1770 = vmatpush1.msra.mxu0 %v3569_v0  ;;  %1841 = vmatpush1.msra.mxu1 %v3570_v60 }
 0x66a   :  { %1771 = vmatprep.subr.mxu0 %v3571_v1  ;;  %1842 = vmatprep.subr.mxu1 %v3572_v59 }
 0x66b   :  { %1772 = vmatpush1.msra.mxu0 %v3573_v20  ;;  %1843 = vmatpush1.msra.mxu1 %v3574_v58 }
 0x66c   :  { %1773 = vmatprep.subr.mxu0 %v3575_v56  ;;  %1844 = vmatprep.subr.mxu1 %v3576_v53 }
 0x66d   :  { %1774 = vmatpush1.msra.mxu0 %v3577_v61  ;;  %1807 = vmatprep.mubr.f32.mxu0 %v3578_v52 }
 0x66e   :  { %1845 = vmatpush1.msra.mxu1 %v3579_v4  ;;  %1878 = vmatprep.mubr.f32.mxu1 %v3578_v52 }
 0x70e   :  { %v1630_v38 = vpop.f32.mrf.mxu0  ;;  %v1701_v19 = vpop.f32.mrf.mxu1 }
 0x70f   :  { %v1706_v63 = vadd.f32 %v1630_v38, %v3580_v11  ;;  %v1708_v22 = vadd.f32 %v1701_v19, %v3582_v21 }
 0x710   :  { %v1632_v3 = vpop.f32.mrf.mxu0  ;;  %v1703_v24 = vpop.f32.mrf.mxu1 }
 0x711   :  { %v1990_v54 = vmul.f32 -1.442695, %v1706_v63  ;;  %v1707_v30 = vadd.f32 %v1632_v3, %v3581_v28  ;;  %v1992_v27 = vmul.f32 -1.442695, %v1708_v22  ;;  %v1709_v37 = vadd.f32 %v1703_v24, %v3583_v36 }
 0x713   :  { %2102 = vpow2.f32 %v1990_v54  ;;  %v1991_v31 = vmul.f32 -1.442695, %v1707_v30 }
 0x715   :  { %2104 = vpow2.f32 %v1991_v31 }
 0x716   :  { %2106 = vpow2.f32 %v1992_v27 }
 0x717   :  { %2108 = vtanh.f32 %v1709_v37 }
 0x720   :  { %v2103_v39 = vpop.eup %2102 }
 0x721   :  { %v1719_v40 = vadd.f32 1.0, %v2103_v39 }
 0x722   :  { %v2105_v41 = vpop.eup %2104 }
 0x723   :  { %2110 = vrcp.f32 %v1719_v40  ;;  %v1720_v42 = vadd.f32 1.0, %v2105_v41  ;;  %v2107_v43 = vpop.eup %2106 }
 0x724   :  { %v2109_v44 = vpop.eup %2108  ;;  %v1721_v49 = vadd.f32 1.0, %v2107_v43 }
 0x725   :  { %2112 = vrcp.f32 %v1720_v42 }
 0x726   :  { %2114 = vrcp.f32 %v1721_v49 }
 0x730   :  { %v2111_v45 = vpop.eup %2110 }
 0x731   :  { %v1730_v46 = vmul.f32 %v2111_v45, %v2109_v44 }
 0x732   :  { %v2113_v48 = vpop.eup %2112 }
 0x733   :  { %v1729_v50 = vmul.f32 %v2113_v48, %v3227_v6  ;;  %v2115_v7 = vpop.eup %2114 }
 0x735   :  { %v1731_v51 = vadd.f32 %v1730_v46, %v1729_v50 }
 0x737   :  { %2116 = vtanh.f32 %v1731_v51 }
 0x744   :  { %v2117_v26 = vpop.eup %2116 }
 0x745   :  { %v1733_v15 = vmul.f32 %v2117_v26, %v2115_v7 }
 0x747   :  { %1735 = vst [vmem:[#allocation11 + $0x30] sm:$0xff] %v1733_v15  ;;  %1808 = vmatmul.mubr.f32.vlgmr.msra.gmra.mxu0 %v1733_v15  ;;  %1879 = vmatmul.mubr.f32.vlgmr.msra.gmra.mxu1 %v1733_v15 }
 0x807   :  { %v1809_v25 = vpop.f32.mrf.mxu0  ;;  %v1880_v13 = vpop.f32.mrf.mxu1 }
 0x808   :  { %v1885_v14 = vadd.f32 %v1809_v25, %v3584_v29  ;;  %v1887_v17 = vadd.f32 %v1880_v13, %v3586_v12 }
 0x809   :  { %v1811_v9 = vpop.f32.mrf.mxu0  ;;  %v1882_v5 = vpop.f32.mrf.mxu1 }
 0x80a   :  { %v1993_v10 = vmul.f32 -1.442695, %v1885_v14  ;;  %v1886_v8 = vadd.f32 %v1811_v9, %v3585_v16  ;;  %v1995_v6 = vmul.f32 -1.442695, %v1887_v17  ;;  %v1888_v2 = vadd.f32 %v1882_v5, %v3587_v62 }
 0x80c   :  { %2118 = vpow2.f32 %v1993_v10  ;;  %v1994_v18 = vmul.f32 -1.442695, %v1886_v8 }
 0x80e   :  { %2120 = vpow2.f32 %v1994_v18 }
 0x80f   :  { %2122 = vpow2.f32 %v1995_v6 }
 0x810   :  { %2124 = vtanh.f32 %v1888_v2 }
 0x819   :  { %v2119_v23 = vpop.eup %2118 }
 0x81a   :  { %v1898_v32 = vadd.f32 1.0, %v2119_v23 }
 0x81b   :  { %v2121_v33 = vpop.eup %2120 }
 0x81c   :  { %2126 = vrcp.f32 %v1898_v32  ;;  %v1899_v57 = vadd.f32 1.0, %v2121_v33  ;;  %v2123_v34 = vpop.eup %2122 }
 0x81d   :  { %v2125_v35 = vpop.eup %2124  ;;  %v1900_v60 = vadd.f32 1.0, %v2123_v34 }
 0x81e   :  { %2128 = vrcp.f32 %v1899_v57 }
 0x81f   :  { %2130 = vrcp.f32 %v1900_v60 }
 0x829   :  { %v2127_v55 = vpop.eup %2126 }
 0x82a   :  { %v1909_v47 = vmul.f32 %v2127_v55, %v2125_v35 }
 0x82b   :  { %v2129_v0 = vpop.eup %2128 }
 0x82c   :  { %v1908_v1 = vmul.f32 %v2129_v0, %v1731_v51 }
 0x82e   :  { %v1910_v59 = vadd.f32 %v1909_v47, %v1908_v1 }
 0x830   :  { %2132 = vtanh.f32 %v1910_v59  ;;  %1920 = vst [vmem:[#allocation12] sm:$0xff] %v1910_v59 }
 0x831   :  { %2269 = shalt.err (!%p2266_p5)
}
 0x832   :  { %1942 = dma.vmem_to_hbm [thread:$0]  %s1940_s9, 128, %s3317_s5, [#allocation13]   ;;  %v2131_v20 = vpop.eup %2130 }
 0x833   :  { %s2315_s13 = smov [#allocation11]  }
 0x834   :  { %s1926_s14 = sshll.u32 %s2315_s13, 4  ;;  %s1927_s14 = int_to_ptr.vmem [resolvable:$true] %s1926_s14 }
 0x835   :  { %s2278_s15 = scalar_lea.vmem %s1927_s14, 1024  ;;  %p2283_p7 = scmp.lt.s32.totalorder %s1927_s14, %s1927_s14 }
 0x836   :  { %p2279_p6 = scmp.ne.s32.totalorder %s1927_s14, %s2278_s15  ;;  %p2284_p8 = scmp.lt.s32.totalorder %s2278_s15, %s2278_s15 }
 0x838   :  { %p2285_p9 = por %p2284_p8, %p2283_p7 }
 0x83a   :  { %p2286_p10 = pnand %p2285_p9, %p2279_p6 }
 0x83d   :  { %v2133_v58 = vpop.eup %2132 }
 0x83e   :  { %v1912_v56 = vmul.f32 %v2133_v58, %v2131_v20 }
 0x840   :  { %1914 = vst [vmem:[#allocation11 + $0x38] sm:$0xff] %v1912_v56 }
 0x841   :  { %2289 = shalt.err (!%p2286_p10)
}
 0x842   :  { %1932 = dma.vmem_to_hbm [thread:$0]  %s1927_s14, 1024, %s3316_s4, [#allocation10], %s2309_s21, %s2309_s21, %s2310_s22  }
 0x843   :  { %2304 = dma.done.wait [#allocation10], 1024  }
 0x844   :  { %2305 = vsyncadd [#allocation10], 4294966272 }
 0x845   :  { %2306 = dma.done.wait [#allocation13], 128  }
 0x846   :  { %2307 = vsyncadd [#allocation13], 4294967168 }
 0x847   :  { %1949 = vsyncpa [#allocation9], 1 }
 0x848   :  { %1950 = vsyncpa [#allocation10], 1 }
 0x849   :  { %1951 = vsyncpa [#allocation13], 1 }
 0x84a   :  { %1952 = vsyncmov [#allocation7] }
 0x84d   :  { %s1953_s5 = vpop.sfrf %1952 }
 0x84e   :  { %p1996_p11 = scmp.ne.s32.totalorder %s1953_s5, 0 }
 0x850   :  { %1957 = shalt.err (%p1996_p11)  }
 0x851   :  { %1959 = vsyncmov [#allocation7 + $0x1] }
 0x854   :  { %s1960_s18 = vpop.sfrf %1959 }
 0x855   :  { %p1997_p12 = scmp.ne.s32.totalorder %s1960_s18, 0 }
 0x857   :  { %1964 = shalt.err (%p1997_p12)  }

</bundles_post_ra>
